<compile_context>
chip_gen: v6e
topology: v6e:2x2x1
jax: 0.10.0
libtpu: 0.0.40
codegen_flags: <defaults>
</compile_context>

<pallas_src>
import jax
import jax.numpy as jnp
from jax.experimental import pallas as pl
from jax.experimental.pallas import tpu as pltpu

KSIZE = 5
PAD = 2


def _fused_conv_kernel(x_ref, w1_ref, b1_ref, w2_ref, b2_ref, o_ref, pad1, pad2):
    # x_ref : (1, H, W)       unpadded input tile (VMEM)
    # w*_ref: (5, 5)          weights (SMEM scalars)
    # b*_ref: (1,)            bias    (SMEM scalar)
    # o_ref : (1, H, W)       output tile (VMEM)
    # pad1/pad2: (H+4, W+4)   zero-padded f32 scratch in VMEM
    H = o_ref.shape[1]
    W = o_ref.shape[2]

    # Hoist every scalar read (SMEM) out of the vector hot loop.
    w1 = [[w1_ref[i, j] for j in range(KSIZE)] for i in range(KSIZE)]
    w2 = [[w2_ref[i, j] for j in range(KSIZE)] for i in range(KSIZE)]
    b1 = b1_ref[0]
    b2 = b2_ref[0]

    def conv5x5(src_ref, w):
        # src_ref: (H+4, W+4) zero-padded image.
        # 5 row-strip loads; lane shifts are slices of the loaded values;
        # 4 partial accumulators keep VALU dependency chains short.
        accs = [jnp.zeros((H, W), jnp.float32) for _ in range(4)]
        t = 0
        for i in range(KSIZE):
            row = src_ref[i:i + H, :]                # (H, W+4): one load per filter row
            for j in range(KSIZE):
                accs[t % 4] = accs[t % 4] + row[:, j:j + W] * w[i][j]
                t += 1
        return (accs[0] + accs[1]) + (accs[2] + accs[3])

    # ---- layer 1: pad in VMEM (no host-side jnp.pad, no HBM round trip) ----
    pad1[...] = jnp.zeros_like(pad1)
    pad1[PAD:PAD + H, PAD:PAD + W] = x_ref[0].astype(jnp.float32)
    h1 = jnp.maximum(conv5x5(pad1, w1) + b1, 0.0)

    # ---- layer 2: intermediate activation never leaves VMEM ----------------
    pad2[...] = jnp.zeros_like(pad2)
    pad2[PAD:PAD + H, PAD:PAD + W] = h1
    h2 = jnp.maximum(conv5x5(pad2, w2) + b2, 0.0)

    o_ref[0] = h2.astype(o_ref.dtype)


def convolution_forward(x, params):
    """Pallas equivalent of Convolution.forward. x: (B, H, W) -> (B, 1, H, W)."""
    w1, b1, w2, b2 = params
    B, H, W = x.shape
    out = pl.pallas_call(
        _fused_conv_kernel,
        out_shape=jax.ShapeDtypeStruct((B, H, W), x.dtype),
        grid=(B,),
        in_specs=[
            pl.BlockSpec((1, H, W), lambda bi: (bi, 0, 0)),
            pl.BlockSpec(memory_space=pltpu.MemorySpace.SMEM),
            pl.BlockSpec(memory_space=pltpu.MemorySpace.SMEM),
            pl.BlockSpec(memory_space=pltpu.MemorySpace.SMEM),
            pl.BlockSpec(memory_space=pltpu.MemorySpace.SMEM),
        ],
        out_specs=pl.BlockSpec((1, H, W), lambda bi: (bi, 0, 0)),
        scratch_shapes=[
            pltpu.VMEM((H + 2 * PAD, W + 2 * PAD), jnp.float32),
            pltpu.VMEM((H + 2 * PAD, W + 2 * PAD), jnp.float32),
        ],
        compiler_params=pltpu.CompilerParams(
            dimension_semantics=("parallel",),
        ),
    )(x, w1, b1, w2, b2)
    return out[:, None, :, :]


def _reference_forward(x, params):
    """Pure-JAX reference using lax.conv (NCHW cross-correlation, like PyTorch)."""
    w1, b1, w2, b2 = params
    xi = x[:, None, :, :]

    def conv(z, w, b):
        y = jax.lax.conv_general_dilated(
            z, w[None, None, :, :], window_strides=(1, 1),
            padding=((PAD, PAD), (PAD, PAD)),
            dimension_numbers=("NCHW", "OIHW", "NCHW"))
        return jnp.maximum(y + b[None, :, None, None], 0.0)

    return conv(conv(xi, w1, b1), w2, b2)


def init_params(key):
    # Deterministic synthetic init matching nn.Conv2d(1, 1, (5,5)) parameter shapes
    # (weight (1,1,5,5) squeezed to (5,5); bias (1,)). Uniform in [-1/sqrt(25), 1/sqrt(25)].
    k1, k2, k3, k4 = jax.random.split(key, 4)
    bound = 1.0 / (KSIZE * KSIZE) ** 0.5
    w1 = jax.random.uniform(k1, (KSIZE, KSIZE), jnp.float32, -bound, bound)
    b1 = jax.random.uniform(k2, (1,), jnp.float32, -bound, bound)
    w2 = jax.random.uniform(k3, (KSIZE, KSIZE), jnp.float32, -bound, bound)
    b2 = jax.random.uniform(k4, (1,), jnp.float32, -bound, bound)
    return (w1, b1, w2, b2)


if __name__ == "__main__":
    key = jax.random.PRNGKey(0)
    kx, kp = jax.random.split(key)
    B, H, W = 2, 16, 16
    x = jax.random.normal(kx, (B, H, W), jnp.float32)
    params = init_params(kp)

    out = convolution_forward(x, params)
    out = jax.block_until_ready(out)

    ref = _reference_forward(x, params)
    assert out.shape == (B, 1, H, W), out.shape
    assert jnp.allclose(out, ref, atol=1e-5, rtol=1e-5), "mismatch vs JAX reference"

    print("KERNEL_OK")
</pallas_src>

<mosaic_0001>
module attributes {stable_mosaic.version = 11 : i64} {
  func.func @_fused_conv_kernel(%arg0: i32, %arg1: memref<1x16x16xf32, #tpu.memory_space<vmem>>, %arg2: memref<5x5xf32, #tpu.memory_space<smem>>, %arg3: memref<1xf32, #tpu.memory_space<smem>>, %arg4: memref<5x5xf32, #tpu.memory_space<smem>>, %arg5: memref<1xf32, #tpu.memory_space<smem>>, %arg6: memref<1x16x16xf32, #tpu.memory_space<vmem>>, %arg7: memref<20x20xf32, #tpu.memory_space<vmem>>, %arg8: memref<20x20xf32, #tpu.memory_space<vmem>>) attributes {dimension_semantics = [#tpu.dimension_semantics<parallel>], iteration_bounds = array<i64: 2>, scalar_prefetch = 0 : i64, scratch_operands = 2 : i64, tpu.core_type = #tpu.core_type<tc>, window_params = [{transform_indices = @transform_0, window_bounds = array<i64: 1, 16, 16>}, {transform_indices = @transform_1, window_bounds = array<i64: 5, 5>}, {transform_indices = @transform_2, window_bounds = array<i64: 1>}, {transform_indices = @transform_3, window_bounds = array<i64: 5, 5>}, {transform_indices = @transform_4, window_bounds = array<i64: 1>}, {transform_indices = @transform_5, window_bounds = array<i64: 1, 16, 16>}]} {
    %c0 = arith.constant 0 : index
    %c0_0 = arith.constant 0 : index
    %0 = memref.load %arg2[%c0, %c0_0] : memref<5x5xf32, #tpu.memory_space<smem>>
    %c0_1 = arith.constant 0 : index
    %c1 = arith.constant 1 : index
    %1 = memref.load %arg2[%c0_1, %c1] : memref<5x5xf32, #tpu.memory_space<smem>>
    %c0_2 = arith.constant 0 : index
    %c2 = arith.constant 2 : index
    %2 = memref.load %arg2[%c0_2, %c2] : memref<5x5xf32, #tpu.memory_space<smem>>
    %c0_3 = arith.constant 0 : index
    %c3 = arith.constant 3 : index
    %3 = memref.load %arg2[%c0_3, %c3] : memref<5x5xf32, #tpu.memory_space<smem>>
    %c0_4 = arith.constant 0 : index
    %c4 = arith.constant 4 : index
    %4 = memref.load %arg2[%c0_4, %c4] : memref<5x5xf32, #tpu.memory_space<smem>>
    %c1_5 = arith.constant 1 : index
    %c0_6 = arith.constant 0 : index
    %5 = memref.load %arg2[%c1_5, %c0_6] : memref<5x5xf32, #tpu.memory_space<smem>>
    %c1_7 = arith.constant 1 : index
    %c1_8 = arith.constant 1 : index
    %6 = memref.load %arg2[%c1_7, %c1_8] : memref<5x5xf32, #tpu.memory_space<smem>>
    %c1_9 = arith.constant 1 : index
    %c2_10 = arith.constant 2 : index
    %7 = memref.load %arg2[%c1_9, %c2_10] : memref<5x5xf32, #tpu.memory_space<smem>>
    %c1_11 = arith.constant 1 : index
    %c3_12 = arith.constant 3 : index
    %8 = memref.load %arg2[%c1_11, %c3_12] : memref<5x5xf32, #tpu.memory_space<smem>>
    %c1_13 = arith.constant 1 : index
    %c4_14 = arith.constant 4 : index
    %9 = memref.load %arg2[%c1_13, %c4_14] : memref<5x5xf32, #tpu.memory_space<smem>>
    %c2_15 = arith.constant 2 : index
    %c0_16 = arith.constant 0 : index
    %10 = memref.load %arg2[%c2_15, %c0_16] : memref<5x5xf32, #tpu.memory_space<smem>>
    %c2_17 = arith.constant 2 : index
    %c1_18 = arith.constant 1 : index
    %11 = memref.load %arg2[%c2_17, %c1_18] : memref<5x5xf32, #tpu.memory_space<smem>>
    %c2_19 = arith.constant 2 : index
    %c2_20 = arith.constant 2 : index
    %12 = memref.load %arg2[%c2_19, %c2_20] : memref<5x5xf32, #tpu.memory_space<smem>>
    %c2_21 = arith.constant 2 : index
    %c3_22 = arith.constant 3 : index
    %13 = memref.load %arg2[%c2_21, %c3_22] : memref<5x5xf32, #tpu.memory_space<smem>>
    %c2_23 = arith.constant 2 : index
    %c4_24 = arith.constant 4 : index
    %14 = memref.load %arg2[%c2_23, %c4_24] : memref<5x5xf32, #tpu.memory_space<smem>>
    %c3_25 = arith.constant 3 : index
    %c0_26 = arith.constant 0 : index
    %15 = memref.load %arg2[%c3_25, %c0_26] : memref<5x5xf32, #tpu.memory_space<smem>>
    %c3_27 = arith.constant 3 : index
    %c1_28 = arith.constant 1 : index
    %16 = memref.load %arg2[%c3_27, %c1_28] : memref<5x5xf32, #tpu.memory_space<smem>>
    %c3_29 = arith.constant 3 : index
    %c2_30 = arith.constant 2 : index
    %17 = memref.load %arg2[%c3_29, %c2_30] : memref<5x5xf32, #tpu.memory_space<smem>>
    %c3_31 = arith.constant 3 : index
    %c3_32 = arith.constant 3 : index
    %18 = memref.load %arg2[%c3_31, %c3_32] : memref<5x5xf32, #tpu.memory_space<smem>>
    %c3_33 = arith.constant 3 : index
    %c4_34 = arith.constant 4 : index
    %19 = memref.load %arg2[%c3_33, %c4_34] : memref<5x5xf32, #tpu.memory_space<smem>>
    %c4_35 = arith.constant 4 : index
    %c0_36 = arith.constant 0 : index
    %20 = memref.load %arg2[%c4_35, %c0_36] : memref<5x5xf32, #tpu.memory_space<smem>>
    %c4_37 = arith.constant 4 : index
    %c1_38 = arith.constant 1 : index
    %21 = memref.load %arg2[%c4_37, %c1_38] : memref<5x5xf32, #tpu.memory_space<smem>>
    %c4_39 = arith.constant 4 : index
    %c2_40 = arith.constant 2 : index
    %22 = memref.load %arg2[%c4_39, %c2_40] : memref<5x5xf32, #tpu.memory_space<smem>>
    %c4_41 = arith.constant 4 : index
    %c3_42 = arith.constant 3 : index
    %23 = memref.load %arg2[%c4_41, %c3_42] : memref<5x5xf32, #tpu.memory_space<smem>>
    %c4_43 = arith.constant 4 : index
    %c4_44 = arith.constant 4 : index
    %24 = memref.load %arg2[%c4_43, %c4_44] : memref<5x5xf32, #tpu.memory_space<smem>>
    %c0_45 = arith.constant 0 : index
    %c0_46 = arith.constant 0 : index
    %25 = memref.load %arg4[%c0_45, %c0_46] : memref<5x5xf32, #tpu.memory_space<smem>>
    %c0_47 = arith.constant 0 : index
    %c1_48 = arith.constant 1 : index
    %26 = memref.load %arg4[%c0_47, %c1_48] : memref<5x5xf32, #tpu.memory_space<smem>>
    %c0_49 = arith.constant 0 : index
    %c2_50 = arith.constant 2 : index
    %27 = memref.load %arg4[%c0_49, %c2_50] : memref<5x5xf32, #tpu.memory_space<smem>>
    %c0_51 = arith.constant 0 : index
    %c3_52 = arith.constant 3 : index
    %28 = memref.load %arg4[%c0_51, %c3_52] : memref<5x5xf32, #tpu.memory_space<smem>>
    %c0_53 = arith.constant 0 : index
    %c4_54 = arith.constant 4 : index
    %29 = memref.load %arg4[%c0_53, %c4_54] : memref<5x5xf32, #tpu.memory_space<smem>>
    %c1_55 = arith.constant 1 : index
    %c0_56 = arith.constant 0 : index
    %30 = memref.load %arg4[%c1_55, %c0_56] : memref<5x5xf32, #tpu.memory_space<smem>>
    %c1_57 = arith.constant 1 : index
    %c1_58 = arith.constant 1 : index
    %31 = memref.load %arg4[%c1_57, %c1_58] : memref<5x5xf32, #tpu.memory_space<smem>>
    %c1_59 = arith.constant 1 : index
    %c2_60 = arith.constant 2 : index
    %32 = memref.load %arg4[%c1_59, %c2_60] : memref<5x5xf32, #tpu.memory_space<smem>>
    %c1_61 = arith.constant 1 : index
    %c3_62 = arith.constant 3 : index
    %33 = memref.load %arg4[%c1_61, %c3_62] : memref<5x5xf32, #tpu.memory_space<smem>>
    %c1_63 = arith.constant 1 : index
    %c4_64 = arith.constant 4 : index
    %34 = memref.load %arg4[%c1_63, %c4_64] : memref<5x5xf32, #tpu.memory_space<smem>>
    %c2_65 = arith.constant 2 : index
    %c0_66 = arith.constant 0 : index
    %35 = memref.load %arg4[%c2_65, %c0_66] : memref<5x5xf32, #tpu.memory_space<smem>>
    %c2_67 = arith.constant 2 : index
    %c1_68 = arith.constant 1 : index
    %36 = memref.load %arg4[%c2_67, %c1_68] : memref<5x5xf32, #tpu.memory_space<smem>>
    %c2_69 = arith.constant 2 : index
    %c2_70 = arith.constant 2 : index
    %37 = memref.load %arg4[%c2_69, %c2_70] : memref<5x5xf32, #tpu.memory_space<smem>>
    %c2_71 = arith.constant 2 : index
    %c3_72 = arith.constant 3 : index
    %38 = memref.load %arg4[%c2_71, %c3_72] : memref<5x5xf32, #tpu.memory_space<smem>>
    %c2_73 = arith.constant 2 : index
    %c4_74 = arith.constant 4 : index
    %39 = memref.load %arg4[%c2_73, %c4_74] : memref<5x5xf32, #tpu.memory_space<smem>>
    %c3_75 = arith.constant 3 : index
    %c0_76 = arith.constant 0 : index
    %40 = memref.load %arg4[%c3_75, %c0_76] : memref<5x5xf32, #tpu.memory_space<smem>>
    %c3_77 = arith.constant 3 : index
    %c1_78 = arith.constant 1 : index
    %41 = memref.load %arg4[%c3_77, %c1_78] : memref<5x5xf32, #tpu.memory_space<smem>>
    %c3_79 = arith.constant 3 : index
    %c2_80 = arith.constant 2 : index
    %42 = memref.load %arg4[%c3_79, %c2_80] : memref<5x5xf32, #tpu.memory_space<smem>>
    %c3_81 = arith.constant 3 : index
    %c3_82 = arith.constant 3 : index
    %43 = memref.load %arg4[%c3_81, %c3_82] : memref<5x5xf32, #tpu.memory_space<smem>>
    %c3_83 = arith.constant 3 : index
    %c4_84 = arith.constant 4 : index
    %44 = memref.load %arg4[%c3_83, %c4_84] : memref<5x5xf32, #tpu.memory_space<smem>>
    %c4_85 = arith.constant 4 : index
    %c0_86 = arith.constant 0 : index
    %45 = memref.load %arg4[%c4_85, %c0_86] : memref<5x5xf32, #tpu.memory_space<smem>>
    %c4_87 = arith.constant 4 : index
    %c1_88 = arith.constant 1 : index
    %46 = memref.load %arg4[%c4_87, %c1_88] : memref<5x5xf32, #tpu.memory_space<smem>>
    %c4_89 = arith.constant 4 : index
    %c2_90 = arith.constant 2 : index
    %47 = memref.load %arg4[%c4_89, %c2_90] : memref<5x5xf32, #tpu.memory_space<smem>>
    %c4_91 = arith.constant 4 : index
    %c3_92 = arith.constant 3 : index
    %48 = memref.load %arg4[%c4_91, %c3_92] : memref<5x5xf32, #tpu.memory_space<smem>>
    %c4_93 = arith.constant 4 : index
    %c4_94 = arith.constant 4 : index
    %49 = memref.load %arg4[%c4_93, %c4_94] : memref<5x5xf32, #tpu.memory_space<smem>>
    %c0_95 = arith.constant 0 : index
    %50 = memref.load %arg3[%c0_95] : memref<1xf32, #tpu.memory_space<smem>>
    %c0_96 = arith.constant 0 : index
    %51 = memref.load %arg5[%c0_96] : memref<1xf32, #tpu.memory_space<smem>>
    %cst = arith.constant 0.000000e+00 : f32
    %52 = vector.broadcast %cst : f32 to vector<20x20xf32>
    %c0_97 = arith.constant 0 : index
    %c0_98 = arith.constant 0 : index
    %53 = vector.load %arg7[%c0_97, %c0_98] : memref<20x20xf32, #tpu.memory_space<vmem>>, vector<20x20xf32>
    tpu.vector_store %arg7[%c0_97, %c0_98], %52 {strides = array<i32>} : memref<20x20xf32, #tpu.memory_space<vmem>>, vector<20x20xf32>,
    %c0_99 = arith.constant 0 : index
    %c0_100 = arith.constant 0 : index
    %c0_101 = arith.constant 0 : index
    %54 = vector.load %arg1[%c0_99, %c0_100, %c0_101] : memref<1x16x16xf32, #tpu.memory_space<vmem>>, vector<1x16x16xf32>
    %55 = vector.shape_cast %54 : vector<1x16x16xf32> to vector<16x16xf32>
    %c2_102 = arith.constant 2 : index
    %c2_103 = arith.constant 2 : index
    %56 = vector.load %arg7[%c2_102, %c2_103] : memref<20x20xf32, #tpu.memory_space<vmem>>, vector<16x16xf32>
    tpu.vector_store %arg7[%c2_102, %c2_103], %55 {strides = array<i32>} : memref<20x20xf32, #tpu.memory_space<vmem>>, vector<16x16xf32>,
    %cst_104 = arith.constant 0.000000e+00 : f32
    %57 = vector.broadcast %cst_104 : f32 to vector<16x16xf32>
    %cst_105 = arith.constant 0.000000e+00 : f32
    %58 = vector.broadcast %cst_105 : f32 to vector<16x16xf32>
    %cst_106 = arith.constant 0.000000e+00 : f32
    %59 = vector.broadcast %cst_106 : f32 to vector<16x16xf32>
    %cst_107 = arith.constant 0.000000e+00 : f32
    %60 = vector.broadcast %cst_107 : f32 to vector<16x16xf32>
    %c0_108 = arith.constant 0 : index
    %c0_109 = arith.constant 0 : index
    %61 = vector.load %arg7[%c0_108, %c0_109] : memref<20x20xf32, #tpu.memory_space<vmem>>, vector<16x20xf32>
    %62 = vector.extract_strided_slice %61 {offsets = [0, 0], sizes = [16, 16], strides = [1, 1]} : vector<16x20xf32> to vector<16x16xf32>
    %63 = vector.broadcast %0 : f32 to vector<16x16xf32>
    %64 = arith.mulf %62, %63 : vector<16x16xf32>
    %65 = arith.addf %57, %64 : vector<16x16xf32>
    %66 = vector.extract_strided_slice %61 {offsets = [0, 1], sizes = [16, 16], strides = [1, 1]} : vector<16x20xf32> to vector<16x16xf32>
    %67 = vector.broadcast %1 : f32 to vector<16x16xf32>
    %68 = arith.mulf %66, %67 : vector<16x16xf32>
    %69 = arith.addf %58, %68 : vector<16x16xf32>
    %70 = vector.extract_strided_slice %61 {offsets = [0, 2], sizes = [16, 16], strides = [1, 1]} : vector<16x20xf32> to vector<16x16xf32>
    %71 = vector.broadcast %2 : f32 to vector<16x16xf32>
    %72 = arith.mulf %70, %71 : vector<16x16xf32>
    %73 = arith.addf %59, %72 : vector<16x16xf32>
    %74 = vector.extract_strided_slice %61 {offsets = [0, 3], sizes = [16, 16], strides = [1, 1]} : vector<16x20xf32> to vector<16x16xf32>
    %75 = vector.broadcast %3 : f32 to vector<16x16xf32>
    %76 = arith.mulf %74, %75 : vector<16x16xf32>
    %77 = arith.addf %60, %76 : vector<16x16xf32>
    %78 = vector.extract_strided_slice %61 {offsets = [0, 4], sizes = [16, 16], strides = [1, 1]} : vector<16x20xf32> to vector<16x16xf32>
    %79 = vector.broadcast %4 : f32 to vector<16x16xf32>
    %80 = arith.mulf %78, %79 : vector<16x16xf32>
    %81 = arith.addf %65, %80 : vector<16x16xf32>
    %c1_110 = arith.constant 1 : index
    %c0_111 = arith.constant 0 : index
    %82 = vector.load %arg7[%c1_110, %c0_111] : memref<20x20xf32, #tpu.memory_space<vmem>>, vector<16x20xf32>
    %83 = vector.extract_strided_slice %82 {offsets = [0, 0], sizes = [16, 16], strides = [1, 1]} : vector<16x20xf32> to vector<16x16xf32>
    %84 = vector.broadcast %5 : f32 to vector<16x16xf32>
    %85 = arith.mulf %83, %84 : vector<16x16xf32>
    %86 = arith.addf %69, %85 : vector<16x16xf32>
    %87 = vector.extract_strided_slice %82 {offsets = [0, 1], sizes = [16, 16], strides = [1, 1]} : vector<16x20xf32> to vector<16x16xf32>
    %88 = vector.broadcast %6 : f32 to vector<16x16xf32>
    %89 = arith.mulf %87, %88 : vector<16x16xf32>
    %90 = arith.addf %73, %89 : vector<16x16xf32>
    %91 = vector.extract_strided_slice %82 {offsets = [0, 2], sizes = [16, 16], strides = [1, 1]} : vector<16x20xf32> to vector<16x16xf32>
    %92 = vector.broadcast %7 : f32 to vector<16x16xf32>
    %93 = arith.mulf %91, %92 : vector<16x16xf32>
    %94 = arith.addf %77, %93 : vector<16x16xf32>
    %95 = vector.extract_strided_slice %82 {offsets = [0, 3], sizes = [16, 16], strides = [1, 1]} : vector<16x20xf32> to vector<16x16xf32>
    %96 = vector.broadcast %8 : f32 to vector<16x16xf32>
    %97 = arith.mulf %95, %96 : vector<16x16xf32>
    %98 = arith.addf %81, %97 : vector<16x16xf32>
    %99 = vector.extract_strided_slice %82 {offsets = [0, 4], sizes = [16, 16], strides = [1, 1]} : vector<16x20xf32> to vector<16x16xf32>
    %100 = vector.broadcast %9 : f32 to vector<16x16xf32>
    %101 = arith.mulf %99, %100 : vector<16x16xf32>
    %102 = arith.addf %86, %101 : vector<16x16xf32>
    %c2_112 = arith.constant 2 : index
    %c0_113 = arith.constant 0 : index
    %103 = vector.load %arg7[%c2_112, %c0_113] : memref<20x20xf32, #tpu.memory_space<vmem>>, vector<16x20xf32>
    %104 = vector.extract_strided_slice %103 {offsets = [0, 0], sizes = [16, 16], strides = [1, 1]} : vector<16x20xf32> to vector<16x16xf32>
    %105 = vector.broadcast %10 : f32 to vector<16x16xf32>
    %106 = arith.mulf %104, %105 : vector<16x16xf32>
    %107 = arith.addf %90, %106 : vector<16x16xf32>
    %108 = vector.extract_strided_slice %103 {offsets = [0, 1], sizes = [16, 16], strides = [1, 1]} : vector<16x20xf32> to vector<16x16xf32>
    %109 = vector.broadcast %11 : f32 to vector<16x16xf32>
    %110 = arith.mulf %108, %109 : vector<16x16xf32>
    %111 = arith.addf %94, %110 : vector<16x16xf32>
    %112 = vector.extract_strided_slice %103 {offsets = [0, 2], sizes = [16, 16], strides = [1, 1]} : vector<16x20xf32> to vector<16x16xf32>
    %113 = vector.broadcast %12 : f32 to vector<16x16xf32>
    %114 = arith.mulf %112, %113 : vector<16x16xf32>
    %115 = arith.addf %98, %114 : vector<16x16xf32>
    %116 = vector.extract_strided_slice %103 {offsets = [0, 3], sizes = [16, 16], strides = [1, 1]} : vector<16x20xf32> to vector<16x16xf32>
    %117 = vector.broadcast %13 : f32 to vector<16x16xf32>
    %118 = arith.mulf %116, %117 : vector<16x16xf32>
    %119 = arith.addf %102, %118 : vector<16x16xf32>
    %120 = vector.extract_strided_slice %103 {offsets = [0, 4], sizes = [16, 16], strides = [1, 1]} : vector<16x20xf32> to vector<16x16xf32>
    %121 = vector.broadcast %14 : f32 to vector<16x16xf32>
    %122 = arith.mulf %120, %121 : vector<16x16xf32>
    %123 = arith.addf %107, %122 : vector<16x16xf32>
    %c3_114 = arith.constant 3 : index
    %c0_115 = arith.constant 0 : index
    %124 = vector.load %arg7[%c3_114, %c0_115] : memref<20x20xf32, #tpu.memory_space<vmem>>, vector<16x20xf32>
    %125 = vector.extract_strided_slice %124 {offsets = [0, 0], sizes = [16, 16], strides = [1, 1]} : vector<16x20xf32> to vector<16x16xf32>
    %126 = vector.broadcast %15 : f32 to vector<16x16xf32>
    %127 = arith.mulf %125, %126 : vector<16x16xf32>
    %128 = arith.addf %111, %127 : vector<16x16xf32>
    %129 = vector.extract_strided_slice %124 {offsets = [0, 1], sizes = [16, 16], strides = [1, 1]} : vector<16x20xf32> to vector<16x16xf32>
    %130 = vector.broadcast %16 : f32 to vector<16x16xf32>
    %131 = arith.mulf %129, %130 : vector<16x16xf32>
    %132 = arith.addf %115, %131 : vector<16x16xf32>
    %133 = vector.extract_strided_slice %124 {offsets = [0, 2], sizes = [16, 16], strides = [1, 1]} : vector<16x20xf32> to vector<16x16xf32>
    %134 = vector.broadcast %17 : f32 to vector<16x16xf32>
    %135 = arith.mulf %133, %134 : vector<16x16xf32>
    %136 = arith.addf %119, %135 : vector<16x16xf32>
    %137 = vector.extract_strided_slice %124 {offsets = [0, 3], sizes = [16, 16], strides = [1, 1]} : vector<16x20xf32> to vector<16x16xf32>
    %138 = vector.broadcast %18 : f32 to vector<16x16xf32>
    %139 = arith.mulf %137, %138 : vector<16x16xf32>
    %140 = arith.addf %123, %139 : vector<16x16xf32>
    %141 = vector.extract_strided_slice %124 {offsets = [0, 4], sizes = [16, 16], strides = [1, 1]} : vector<16x20xf32> to vector<16x16xf32>
    %142 = vector.broadcast %19 : f32 to vector<16x16xf32>
    %143 = arith.mulf %141, %142 : vector<16x16xf32>
    %144 = arith.addf %128, %143 : vector<16x16xf32>
    %c4_116 = arith.constant 4 : index
    %c0_117 = arith.constant 0 : index
    %145 = vector.load %arg7[%c4_116, %c0_117] : memref<20x20xf32, #tpu.memory_space<vmem>>, vector<16x20xf32>
    %146 = vector.extract_strided_slice %145 {offsets = [0, 0], sizes = [16, 16], strides = [1, 1]} : vector<16x20xf32> to vector<16x16xf32>
    %147 = vector.broadcast %20 : f32 to vector<16x16xf32>
    %148 = arith.mulf %146, %147 : vector<16x16xf32>
    %149 = arith.addf %132, %148 : vector<16x16xf32>
    %150 = vector.extract_strided_slice %145 {offsets = [0, 1], sizes = [16, 16], strides = [1, 1]} : vector<16x20xf32> to vector<16x16xf32>
    %151 = vector.broadcast %21 : f32 to vector<16x16xf32>
    %152 = arith.mulf %150, %151 : vector<16x16xf32>
    %153 = arith.addf %136, %152 : vector<16x16xf32>
    %154 = vector.extract_strided_slice %145 {offsets = [0, 2], sizes = [16, 16], strides = [1, 1]} : vector<16x20xf32> to vector<16x16xf32>
    %155 = vector.broadcast %22 : f32 to vector<16x16xf32>
    %156 = arith.mulf %154, %155 : vector<16x16xf32>
    %157 = arith.addf %140, %156 : vector<16x16xf32>
    %158 = vector.extract_strided_slice %145 {offsets = [0, 3], sizes = [16, 16], strides = [1, 1]} : vector<16x20xf32> to vector<16x16xf32>
    %159 = vector.broadcast %23 : f32 to vector<16x16xf32>
    %160 = arith.mulf %158, %159 : vector<16x16xf32>
    %161 = arith.addf %144, %160 : vector<16x16xf32>
    %162 = vector.extract_strided_slice %145 {offsets = [0, 4], sizes = [16, 16], strides = [1, 1]} : vector<16x20xf32> to vector<16x16xf32>
    %163 = vector.broadcast %24 : f32 to vector<16x16xf32>
    %164 = arith.mulf %162, %163 : vector<16x16xf32>
    %165 = arith.addf %149, %164 : vector<16x16xf32>
    %166 = arith.addf %165, %153 : vector<16x16xf32>
    %167 = arith.addf %157, %161 : vector<16x16xf32>
    %168 = arith.addf %166, %167 : vector<16x16xf32>
    %169 = vector.broadcast %50 : f32 to vector<16x16xf32>
    %170 = arith.addf %168, %169 : vector<16x16xf32>
    %cst_118 = arith.constant 0.000000e+00 : f32
    %171 = vector.broadcast %cst_118 : f32 to vector<16x16xf32>
    %172 = arith.maximumf %170, %171 : vector<16x16xf32>
    %cst_119 = arith.constant 0.000000e+00 : f32
    %173 = vector.broadcast %cst_119 : f32 to vector<20x20xf32>
    %c0_120 = arith.constant 0 : index
    %c0_121 = arith.constant 0 : index
    %174 = vector.load %arg8[%c0_120, %c0_121] : memref<20x20xf32, #tpu.memory_space<vmem>>, vector<20x20xf32>
    tpu.vector_store %arg8[%c0_120, %c0_121], %173 {strides = array<i32>} : memref<20x20xf32, #tpu.memory_space<vmem>>, vector<20x20xf32>,
    %c2_122 = arith.constant 2 : index
    %c2_123 = arith.constant 2 : index
    %175 = vector.load %arg8[%c2_122, %c2_123] : memref<20x20xf32, #tpu.memory_space<vmem>>, vector<16x16xf32>
    tpu.vector_store %arg8[%c2_122, %c2_123], %172 {strides = array<i32>} : memref<20x20xf32, #tpu.memory_space<vmem>>, vector<16x16xf32>,
    %cst_124 = arith.constant 0.000000e+00 : f32
    %176 = vector.broadcast %cst_124 : f32 to vector<16x16xf32>
    %cst_125 = arith.constant 0.000000e+00 : f32
    %177 = vector.broadcast %cst_125 : f32 to vector<16x16xf32>
    %cst_126 = arith.constant 0.000000e+00 : f32
    %178 = vector.broadcast %cst_126 : f32 to vector<16x16xf32>
    %cst_127 = arith.constant 0.000000e+00 : f32
    %179 = vector.broadcast %cst_127 : f32 to vector<16x16xf32>
    %c0_128 = arith.constant 0 : index
    %c0_129 = arith.constant 0 : index
    %180 = vector.load %arg8[%c0_128, %c0_129] : memref<20x20xf32, #tpu.memory_space<vmem>>, vector<16x20xf32>
    %181 = vector.extract_strided_slice %180 {offsets = [0, 0], sizes = [16, 16], strides = [1, 1]} : vector<16x20xf32> to vector<16x16xf32>
    %182 = vector.broadcast %25 : f32 to vector<16x16xf32>
    %183 = arith.mulf %181, %182 : vector<16x16xf32>
    %184 = arith.addf %176, %183 : vector<16x16xf32>
    %185 = vector.extract_strided_slice %180 {offsets = [0, 1], sizes = [16, 16], strides = [1, 1]} : vector<16x20xf32> to vector<16x16xf32>
    %186 = vector.broadcast %26 : f32 to vector<16x16xf32>
    %187 = arith.mulf %185, %186 : vector<16x16xf32>
    %188 = arith.addf %177, %187 : vector<16x16xf32>
    %189 = vector.extract_strided_slice %180 {offsets = [0, 2], sizes = [16, 16], strides = [1, 1]} : vector<16x20xf32> to vector<16x16xf32>
    %190 = vector.broadcast %27 : f32 to vector<16x16xf32>
    %191 = arith.mulf %189, %190 : vector<16x16xf32>
    %192 = arith.addf %178, %191 : vector<16x16xf32>
    %193 = vector.extract_strided_slice %180 {offsets = [0, 3], sizes = [16, 16], strides = [1, 1]} : vector<16x20xf32> to vector<16x16xf32>
    %194 = vector.broadcast %28 : f32 to vector<16x16xf32>
    %195 = arith.mulf %193, %194 : vector<16x16xf32>
    %196 = arith.addf %179, %195 : vector<16x16xf32>
    %197 = vector.extract_strided_slice %180 {offsets = [0, 4], sizes = [16, 16], strides = [1, 1]} : vector<16x20xf32> to vector<16x16xf32>
    %198 = vector.broadcast %29 : f32 to vector<16x16xf32>
    %199 = arith.mulf %197, %198 : vector<16x16xf32>
    %200 = arith.addf %184, %199 : vector<16x16xf32>
    %c1_130 = arith.constant 1 : index
    %c0_131 = arith.constant 0 : index
    %201 = vector.load %arg8[%c1_130, %c0_131] : memref<20x20xf32, #tpu.memory_space<vmem>>, vector<16x20xf32>
    %202 = vector.extract_strided_slice %201 {offsets = [0, 0], sizes = [16, 16], strides = [1, 1]} : vector<16x20xf32> to vector<16x16xf32>
    %203 = vector.broadcast %30 : f32 to vector<16x16xf32>
    %204 = arith.mulf %202, %203 : vector<16x16xf32>
    %205 = arith.addf %188, %204 : vector<16x16xf32>
    %206 = vector.extract_strided_slice %201 {offsets = [0, 1], sizes = [16, 16], strides = [1, 1]} : vector<16x20xf32> to vector<16x16xf32>
    %207 = vector.broadcast %31 : f32 to vector<16x16xf32>
    %208 = arith.mulf %206, %207 : vector<16x16xf32>
    %209 = arith.addf %192, %208 : vector<16x16xf32>
    %210 = vector.extract_strided_slice %201 {offsets = [0, 2], sizes = [16, 16], strides = [1, 1]} : vector<16x20xf32> to vector<16x16xf32>
    %211 = vector.broadcast %32 : f32 to vector<16x16xf32>
    %212 = arith.mulf %210, %211 : vector<16x16xf32>
    %213 = arith.addf %196, %212 : vector<16x16xf32>
    %214 = vector.extract_strided_slice %201 {offsets = [0, 3], sizes = [16, 16], strides = [1, 1]} : vector<16x20xf32> to vector<16x16xf32>
    %215 = vector.broadcast %33 : f32 to vector<16x16xf32>
    %216 = arith.mulf %214, %215 : vector<16x16xf32>
    %217 = arith.addf %200, %216 : vector<16x16xf32>
    %218 = vector.extract_strided_slice %201 {offsets = [0, 4], sizes = [16, 16], strides = [1, 1]} : vector<16x20xf32> to vector<16x16xf32>
    %219 = vector.broadcast %34 : f32 to vector<16x16xf32>
    %220 = arith.mulf %218, %219 : vector<16x16xf32>
    %221 = arith.addf %205, %220 : vector<16x16xf32>
    %c2_132 = arith.constant 2 : index
    %c0_133 = arith.constant 0 : index
    %222 = vector.load %arg8[%c2_132, %c0_133] : memref<20x20xf32, #tpu.memory_space<vmem>>, vector<16x20xf32>
    %223 = vector.extract_strided_slice %222 {offsets = [0, 0], sizes = [16, 16], strides = [1, 1]} : vector<16x20xf32> to vector<16x16xf32>
    %224 = vector.broadcast %35 : f32 to vector<16x16xf32>
    %225 = arith.mulf %223, %224 : vector<16x16xf32>
    %226 = arith.addf %209, %225 : vector<16x16xf32>
    %227 = vector.extract_strided_slice %222 {offsets = [0, 1], sizes = [16, 16], strides = [1, 1]} : vector<16x20xf32> to vector<16x16xf32>
    %228 = vector.broadcast %36 : f32 to vector<16x16xf32>
    %229 = arith.mulf %227, %228 : vector<16x16xf32>
    %230 = arith.addf %213, %229 : vector<16x16xf32>
    %231 = vector.extract_strided_slice %222 {offsets = [0, 2], sizes = [16, 16], strides = [1, 1]} : vector<16x20xf32> to vector<16x16xf32>
    %232 = vector.broadcast %37 : f32 to vector<16x16xf32>
    %233 = arith.mulf %231, %232 : vector<16x16xf32>
    %234 = arith.addf %217, %233 : vector<16x16xf32>
    %235 = vector.extract_strided_slice %222 {offsets = [0, 3], sizes = [16, 16], strides = [1, 1]} : vector<16x20xf32> to vector<16x16xf32>
    %236 = vector.broadcast %38 : f32 to vector<16x16xf32>
    %237 = arith.mulf %235, %236 : vector<16x16xf32>
    %238 = arith.addf %221, %237 : vector<16x16xf32>
    %239 = vector.extract_strided_slice %222 {offsets = [0, 4], sizes = [16, 16], strides = [1, 1]} : vector<16x20xf32> to vector<16x16xf32>
    %240 = vector.broadcast %39 : f32 to vector<16x16xf32>
    %241 = arith.mulf %239, %240 : vector<16x16xf32>
    %242 = arith.addf %226, %241 : vector<16x16xf32>
    %c3_134 = arith.constant 3 : index
    %c0_135 = arith.constant 0 : index
    %243 = vector.load %arg8[%c3_134, %c0_135] : memref<20x20xf32, #tpu.memory_space<vmem>>, vector<16x20xf32>
    %244 = vector.extract_strided_slice %243 {offsets = [0, 0], sizes = [16, 16], strides = [1, 1]} : vector<16x20xf32> to vector<16x16xf32>
    %245 = vector.broadcast %40 : f32 to vector<16x16xf32>
    %246 = arith.mulf %244, %245 : vector<16x16xf32>
    %247 = arith.addf %230, %246 : vector<16x16xf32>
    %248 = vector.extract_strided_slice %243 {offsets = [0, 1], sizes = [16, 16], strides = [1, 1]} : vector<16x20xf32> to vector<16x16xf32>
    %249 = vector.broadcast %41 : f32 to vector<16x16xf32>
    %250 = arith.mulf %248, %249 : vector<16x16xf32>
    %251 = arith.addf %234, %250 : vector<16x16xf32>
    %252 = vector.extract_strided_slice %243 {offsets = [0, 2], sizes = [16, 16], strides = [1, 1]} : vector<16x20xf32> to vector<16x16xf32>
    %253 = vector.broadcast %42 : f32 to vector<16x16xf32>
    %254 = arith.mulf %252, %253 : vector<16x16xf32>
    %255 = arith.addf %238, %254 : vector<16x16xf32>
    %256 = vector.extract_strided_slice %243 {offsets = [0, 3], sizes = [16, 16], strides = [1, 1]} : vector<16x20xf32> to vector<16x16xf32>
    %257 = vector.broadcast %43 : f32 to vector<16x16xf32>
    %258 = arith.mulf %256, %257 : vector<16x16xf32>
    %259 = arith.addf %242, %258 : vector<16x16xf32>
    %260 = vector.extract_strided_slice %243 {offsets = [0, 4], sizes = [16, 16], strides = [1, 1]} : vector<16x20xf32> to vector<16x16xf32>
    %261 = vector.broadcast %44 : f32 to vector<16x16xf32>
    %262 = arith.mulf %260, %261 : vector<16x16xf32>
    %263 = arith.addf %247, %262 : vector<16x16xf32>
    %c4_136 = arith.constant 4 : index
    %c0_137 = arith.constant 0 : index
    %264 = vector.load %arg8[%c4_136, %c0_137] : memref<20x20xf32, #tpu.memory_space<vmem>>, vector<16x20xf32>
    %265 = vector.extract_strided_slice %264 {offsets = [0, 0], sizes = [16, 16], strides = [1, 1]} : vector<16x20xf32> to vector<16x16xf32>
    %266 = vector.broadcast %45 : f32 to vector<16x16xf32>
    %267 = arith.mulf %265, %266 : vector<16x16xf32>
    %268 = arith.addf %251, %267 : vector<16x16xf32>
    %269 = vector.extract_strided_slice %264 {offsets = [0, 1], sizes = [16, 16], strides = [1, 1]} : vector<16x20xf32> to vector<16x16xf32>
    %270 = vector.broadcast %46 : f32 to vector<16x16xf32>
    %271 = arith.mulf %269, %270 : vector<16x16xf32>
    %272 = arith.addf %255, %271 : vector<16x16xf32>
    %273 = vector.extract_strided_slice %264 {offsets = [0, 2], sizes = [16, 16], strides = [1, 1]} : vector<16x20xf32> to vector<16x16xf32>
    %274 = vector.broadcast %47 : f32 to vector<16x16xf32>
    %275 = arith.mulf %273, %274 : vector<16x16xf32>
    %276 = arith.addf %259, %275 : vector<16x16xf32>
    %277 = vector.extract_strided_slice %264 {offsets = [0, 3], sizes = [16, 16], strides = [1, 1]} : vector<16x20xf32> to vector<16x16xf32>
    %278 = vector.broadcast %48 : f32 to vector<16x16xf32>
    %279 = arith.mulf %277, %278 : vector<16x16xf32>
    %280 = arith.addf %263, %279 : vector<16x16xf32>
    %281 = vector.extract_strided_slice %264 {offsets = [0, 4], sizes = [16, 16], strides = [1, 1]} : vector<16x20xf32> to vector<16x16xf32>
    %282 = vector.broadcast %49 : f32 to vector<16x16xf32>
    %283 = arith.mulf %281, %282 : vector<16x16xf32>
    %284 = arith.addf %268, %283 : vector<16x16xf32>
    %285 = arith.addf %284, %272 : vector<16x16xf32>
    %286 = arith.addf %276, %280 : vector<16x16xf32>
    %287 = arith.addf %285, %286 : vector<16x16xf32>
    %288 = vector.broadcast %51 : f32 to vector<16x16xf32>
    %289 = arith.addf %287, %288 : vector<16x16xf32>
    %cst_138 = arith.constant 0.000000e+00 : f32
    %290 = vector.broadcast %cst_138 : f32 to vector<16x16xf32>
    %291 = arith.maximumf %289, %290 : vector<16x16xf32>
    %c0_139 = arith.constant 0 : index
    %c0_140 = arith.constant 0 : index
    %c0_141 = arith.constant 0 : index
    %292 = vector.load %arg6[%c0_139, %c0_140, %c0_141] : memref<1x16x16xf32, #tpu.memory_space<vmem>>, vector<1x16x16xf32>
    %293 = vector.shape_cast %292 : vector<1x16x16xf32> to vector<16x16xf32>
    %294 = vector.shape_cast %291 : vector<16x16xf32> to vector<1x16x16xf32>
    tpu.vector_store %arg6[%c0_139, %c0_140, %c0_141], %294 {strides = array<i32>} : memref<1x16x16xf32, #tpu.memory_space<vmem>>, vector<1x16x16xf32>,
    return
  }
  func.func @transform_0(%arg0: i32) -> (i32, i32, i32) {
    %c0_i32 = arith.constant 0 : i32
    %c0_i32_0 = arith.constant 0 : i32
    %c0_i32_1 = arith.constant 0 : i32
    return %arg0, %c0_i32, %c0_i32_0 : i32, i32, i32
  }
  func.func @transform_1(%arg0: i32) -> (i32, i32) {
    %c0_i32 = arith.constant 0 : i32
    %c0_i32_0 = arith.constant 0 : i32
    %c0_i32_1 = arith.constant 0 : i32
    return %c0_i32, %c0_i32_0 : i32, i32
  }
  func.func @transform_2(%arg0: i32) -> i32 {
    %c0_i32 = arith.constant 0 : i32
    %c0_i32_0 = arith.constant 0 : i32
    return %c0_i32 : i32
  }
  func.func @transform_3(%arg0: i32) -> (i32, i32) {
    %c0_i32 = arith.constant 0 : i32
    %c0_i32_0 = arith.constant 0 : i32
    %c0_i32_1 = arith.constant 0 : i32
    return %c0_i32, %c0_i32_0 : i32, i32
  }
  func.func @transform_4(%arg0: i32) -> i32 {
    %c0_i32 = arith.constant 0 : i32
    %c0_i32_0 = arith.constant 0 : i32
    return %c0_i32 : i32
  }
  func.func @transform_5(%arg0: i32) -> (i32, i32, i32) {
    %c0_i32 = arith.constant 0 : i32
    %c0_i32_0 = arith.constant 0 : i32
    %c0_i32_1 = arith.constant 0 : i32
    return %arg0, %c0_i32, %c0_i32_0 : i32, i32, i32
  }
}

</mosaic_0001>

<bundles_post_ra>
// kernel: tpu_custom_call.1
= control target key start
LH: loop header
LB: loop body
LE: loop exit
PB: predicated region body
PF: predicated region fallthrough
CT: control target
= control target key end

     0   :  { %s1888_s0 = inlined_call_operand.hbm [shape: f32[2,16,16], index: 0, kind: input, shape index: {}]   ;;  %s1889_s1 = inlined_call_operand.hbm [shape: f32[5,5], index: 1, kind: input, shape index: {}]   ;;  %s1890_s2 = inlined_call_operand.<no memory space> [shape: f32[1], index: 2, kind: input, shape index: {}]   ;;  %s1891_s3 = inlined_call_operand.hbm [shape: f32[5,5], index: 3, kind: input, shape index: {}]   ;;  %s1892_s4 = inlined_call_operand.<no memory space> [shape: f32[1], index: 4, kind: input, shape index: {}]   ;;  %s1893_s5 = inlined_call_operand.hbm [shape: f32[2,16,16], index: 5, kind: output, shape index: {}]  }
   0x1   :  { %10 = sst [smem:[#allocation4]] %s1890_s2 }
   0x2   :  { %11 = sst [smem:[#allocation5]] %s1892_s4 }
   0x3   :  { %12 = vsyncpa [#allocation7], 0 }
   0x4   :  { %14 = vsyncpa [#allocation7 + $0x1], 0 }
   0x5   :  { %15 = vsyncpa [#allocation9], 0 }
   0x6   :  { %16 = vsyncpa [#allocation12], 0 }
   0x7   :  { %17 = vsyncpa [#allocation8], 0 }
   0x8   :  { %19 = vsyncpa [#allocation8 + $0x1], 0  ;;  %s1398_s22 = smov 0   ;;  %s1400_s23 = smov 0  }
   0x9   :  { %s1402_s24 = smov 0   ;;  %s1404_s25 = smov 0  }
   0xa LB: > { %s1419_s2 = sadd.s32 4294967295, %s1344_s25   ;;  %s1075_s4 = sadd.s32 4294967294, %s1344_s25   ;;  %s1344_s25 = sphi %s1404_s25, %s1918_s25   ;;  %s1340_s24 = sphi %s1402_s24, %s1917_s24   ;;  %s1336_s23 = sphi %s1400_s23, %s1916_s23   ;;  %s1332_s22 = sphi %s1398_s22, %s1915_s22  }
   0xb   : > { %s1423_s26 = sadd.s32 1, %s1344_s25   ;;  %s32_s27 = sadd.s32 1, %s1340_s24 }
   0xc   : > { %s29_s28 = ssub.s32 %s1344_s25, %s1423_s26  ;;  %p39_p0 = scmp.ne.s32.totalorder %s1340_s24, %s1336_s23 }
   0xd   : > { %p30_p1 = scmp.eq.s32.totalorder %s29_s28, 0  ;;  %p40_p2 = scmp.eq.s32.totalorder %s1344_s25, 0 }
   0xe   : > { %p45_p3 = scmp.ne.s32.totalorder %s1336_s23, %s1332_s22  ;;  %p1894_p4 = scmp.eq.s32.totalorder %s1419_s2, 0 }
   0xf   : > { %s1435_s29 = scalar_select %p30_p1, %s1340_s24, %s32_s27  }
  0x10   : > { %p1437_p5 = por %p40_p2, %p39_p0  ;;  %p1443_p6 = por %p1894_p4, %p45_p3 }
  0x11   : > { %p153_p7 = scmp.eq.s32.totalorder %s1419_s2, 1  ;;  %p159_p8 = scmp.eq.s32.totalorder %s1075_s4, 1 }
  0x12   : > { %s1898_s30 = scalar_select %p1437_p5, 1, 0 }
  0x13   : > { %s1899_s6 = scalar_select %p1443_p6, 1, 0 }
  0x14   : > { %p1076_p9 = scmp.ge.s32.totalorder %s1344_s25, 1  ;;  %p166_p10 = scmp.lt.s32.totalorder %s1344_s25, 3 }
  0x15   : > { %p1450_p11 = por %p153_p7, %p39_p0  ;;  %p1454_p12 = por %p159_p8, %p45_p3 }
  0x16   : > { %p1458_p13 = pnand %p1076_p9, %p166_p10  ;;  %p1172_p4 = scmp.lt.s32.totalorder %s1344_s25, 2 }
  0x17   : > { %s1900_s7 = scalar_select %p1450_p11, 1, 0 }
  0x18   : > { %s1901_s8 = scalar_select %p1454_p12, 1, 0 }
  0x19   : > { %s1902_s9 = scalar_select %p1458_p13, 1, 0 }
  0x1a   : > { %p1155_p2 = pneg %p1458_p13  ;;  %s203_s10 = sand.u32 1, %s1340_s24  }
  0x1b   : > { %p1903_p6 = scmp.eq.s32.totalorder %s1419_s2, 0  ;;  %p1904_p0 = scmp.ne.s32.totalorder %s1898_s30, 0 }
  0x1c   : > { %s1080_s12 = sshll.u32 %s203_s10, 4  ;;  %s1346_s13 = smov [#allocation10]  }
  0x1d   : > { %p1156_p5 = pnand %p1155_p2, %p1903_p6  ;;  %p1471_p7 = pnand %p1172_p4, %p1904_p0 }
  0x1e   : > { %s1347_s16 = smov [#allocation11]   ;;  %s1141_s19 = sshll.u32 %s1344_s25, 8 }
  0x1f   : > { %1158 = dma.hbm_to_smem (!%p1156_p5), %s1889_s1, 128, %s1346_s13, [#allocation9]  }
  0x20   : > { %1161 = dma.hbm_to_smem (!%p1156_p5), %s1891_s3, 128, %s1347_s16, [#allocation12]  }
  0x21   : > { %s1485_s4 = scalar_lea.hbm %s1888_s0, %s1141_s19  ;;  %s207_s27 = scalar_lea.vmem [#allocation6], %s1080_s12 }
  0x22   : > { %s214_s28 = sshll.u32 %s207_s27, 4  ;;  %s1489_s30 = scalar_lea.sflag [#allocation7], %s203_s10  ;;  %s1487_s28 = int_to_ptr.vmem [resolvable:$true] %s214_s28 }
  0x23   : > { %s1244_s13 = scalar_lea.hbm %s1485_s4, 256  ;;  %p1246_p4 = pneg %p1471_p7 }
  0x24   : > { %p1245_p3 = scmp.ne.s32.totalorder %s1485_s4, %s1244_s13  ;;  %s1249_s16 = scalar_lea.hbm %s1888_s0, 512 }
  0x25   : > { %p1250_p8 = scmp.lt.s32.totalorder %s1485_s4, %s1888_s0  ;;  %p1251_p9 = scmp.lt.s32.totalorder %s1249_s16, %s1244_s13 }
  0x26   : > { %p1247_p5 = pnand %p1246_p4, %p1245_p3 }
  0x27   : > { %p1252_p10 = por %p1251_p9, %p1250_p8 }
  0x28   : > { %p1248_p6 = pneg %p1247_p5 }
  0x2a   : > { %p1253_p2 = pnand %p1252_p10, %p1248_p6 }
  0x2c   : > { %1256 = shalt.err (!%p1253_p2)
}
  0x2d   : > { %s1257_s10 = scalar_lea.vmem %s1487_s28, 256  ;;  %s1348_s12 = smov [#allocation6]  }
  0x2e   : > { %p1258_p0 = scmp.ne.s32.totalorder %s1487_s28, %s1257_s10  ;;  %s1262_s19 = sshll.u32 %s1348_s12, 4  ;;  %s1263_s19 = int_to_ptr.vmem [resolvable:$false] %s1262_s19 }
  0x2f   : > { %s1264_s20 = scalar_lea.vmem %s1263_s19, 512  ;;  %p1265_p5 = scmp.lt.s32.totalorder %s1487_s28, %s1263_s19 }
  0x30   : > { %p1260_p1 = pnand %p1258_p0, %p1246_p4  ;;  %p1266_p12 = scmp.lt.s32.totalorder %s1264_s20, %s1257_s10 }
  0x32   : > { %p1261_p3 = pneg %p1260_p1  ;;  %p1267_p11 = por %p1266_p12, %p1265_p5 }
  0x34   : > { %p1268_p13 = pnand %p1267_p11, %p1261_p3 }
  0x36   : > { %1271 = shalt.err (!%p1268_p13)
}
  0x37   : > { %s1349_s21 = smov 128   ;;  %s1350_s27 = smov 8  }
  0x38   : > { %1165 = dma.hbm_to_vmem [thread:$0]  (!%p1471_p7), %s1485_s4, 256, %s1487_s28, %s1489_s30, %s1349_s21, %s1349_s21, %s1350_s27  }
  0x39   : > { %p1906_p4 = scmp.ne.s32.totalorder %s1902_s9, 0 }
  0x3a   : > { %s1513_s13 = sand.u32 (!%p1906_p4), 1, %s1336_s23   ;;  %p1907_p11 = scmp.ne.s32.totalorder (!%p1906_p4), %s1899_s6, 0 }
  0x3b   : > { %226 = sbr.rel (%p1906_p4) target bundleno = 1082 (0x43a), region = 40  ;;  %s1084_s14 = sshll.u32 (!%p1906_p4), %s1513_s13, 4 }
  0x3c   : > { %s229_s15 = scalar_lea.sflag (!%p1906_p4), [#allocation7], %s1513_s13  ;;  %s232_s16 = scalar_lea.vmem (!%p1906_p4), [#allocation6], %s1084_s14 }
  0x40   : > { %1315 = dma.done.wait (%p1907_p11), %s229_s15, 256  }
  0x41   : > { %1317 = vsyncadd (%p1907_p11), %s229_s15, 4294967040  ;;  %p1908_p12 = scmp.eq.s32.totalorder %s1419_s2, 0 }
  0x43   : > { %1319 = dma.done.wait (%p1908_p12), [#allocation9], 128   ;;  %p1909_p13 = pmov %p1908_p12 }
  0x44   : > { %p1910_p1 = pmov %p1908_p12 }
  0x45   : > { %1321 = vsyncadd (%p1909_p13), [#allocation9], 4294967168 }
  0x46   : > { %1323 = dma.done.wait (%p1910_p1), [#allocation12], 128   ;;  %p1911_p7 = pmov %p1910_p1 }
  0x48   : > { %1325 = vsyncadd (%p1911_p7), [#allocation12], 4294967168 }
  0x49   : > { %245 = sfence }
  0x4a   : > { %v325_v0 = vld [vmem:[%s232_s16] sm:$0xff]  ;;  %vm320_vm0 = vcmask 162816   ;;  %s1351_s9 = smov 2   ;;  %v1352_v1 = vmov 0.0   ;;  %vm323_vm1 = vcmask 158720   ;;  %v326_v2 = vld [vmem:[%s232_s16 + $0x8] sm:$0xff] }
  0x4b   : > { %329 = vrot.lane.b32.xlu0 %v325_v0, %s1351_s9  ;;  %321 = vst.msk [vmem:[#allocation2] sm:$0xff] %vm320_vm0, %v1352_v1  ;;  %322 = vst.msk [vmem:[#allocation2 + $0x8] sm:$0xff] %vm320_vm0, %v1352_v1  ;;  %s1533_s6 = sld [smem:[#allocation10 + $0x101]]  ;;  %vm335_vm2 = vcmask 146448   ;;  %s1353_s17 = smov 1   ;;  %vm963_vm3 = vcmask 130048  }
  0x4c   : > { %644 = vst.msk [vmem:[#allocation3] sm:$0xff] %vm320_vm0, %v1352_v1  ;;  %645 = vst.msk [vmem:[#allocation3 + $0x8] sm:$0xff] %vm320_vm0, %v1352_v1  ;;  %s1094_s11 = sld [smem:[#allocation10 + $0x82]]  ;;  %s1354_s10 = smov 3  }
  0x4d   : > { %324 = vst.msk [vmem:[#allocation2 + $0x10] sm:$0xf] %vm323_vm1, %v1352_v1  ;;  %646 = vst.msk [vmem:[#allocation3 + $0x10] sm:$0xf] %vm323_vm1, %v1352_v1  ;;  %s1536_s4 = sld [smem:[#allocation10 + $0x180]]  ;;  %s1355_s19 = smov 127  }
  0x4e   : > { %s1540_s28 = sld [smem:[#allocation10 + $0x184]]  ;;  %s1356_s15 = smov 125  }
  0x4f   : > { %331 = vrot.lane.b32.xlu0 %v326_v2, %s1351_s9  ;;  %s1549_s30 = sld [smem:[#allocation10 + $0x80]]  ;;  %p1912_p8 = scmp.ne.s32.totalorder %s1900_s7, 0 }
  0x50   : > { %s1562_s18 = sld [smem:[#allocation10 + $0x81]] }
  0x51   : > { %v455_v5 = vstv %s1533_s6  ;;  %s1096_s12 = sld [smem:[#allocation10 + $0x84]] }
  0x52   : > { %v401_v6 = vstv %s1094_s11  ;;  %s1097_s20 = sld [smem:[#allocation10 + $0x100]]  ;;  %s1357_s11 = smov 126  }
  0x53   : > { %v509_v11 = vstv %s1536_s4  ;;  %s1100_s21 = sld [smem:[#allocation10 + $0x103]] }
  0x54   : > { %v561_v16 = vstv %s1540_s28  ;;  %s1101_s27 = sld [smem:[#allocation10 + $0x104]] }
  0x55   : > { %v375_v21 = vstv %s1549_s30  ;;  %s1104_s16 = sld [smem:[#allocation10 + $0x182]] }
  0x56   : > { %v388_v24 = vstv %s1562_s18  ;;  %s1105_s6 = sld [smem:[#allocation10 + $0x183]] }
  0x57   : > { %v427_v27 = vstv %s1096_s12  ;;  %s1090_s4 = sld [smem:[#allocation10 + $0x3]] }
  0x58   : > { %v442_v30 = vstv %s1097_s20  ;;  %s1612_s28 = sld [smem:[#allocation10 + $0x203]] }
  0x59   : > { %v481_v33 = vstv %s1100_s21  ;;  %s1615_s30 = sld [smem:[#allocation10 + $0x2]] }
  0x5a   : > { %v494_v36 = vstv %s1101_s27  ;;  %s1617_s18 = sld [smem:[#allocation10 + $0x4]]  ;;  %s1358_s27 = smov 124  }
  0x5b   : > { %v535_v39 = vstv %s1104_s16  ;;  %s1624_s12 = sld [smem:[#allocation10 + $0x83]] }
  0x5c   : > { %v548_v42 = vstv %s1105_s6  ;;  %s1630_s20 = sld [smem:[#allocation10 + $0x102]] }
  0x5d   : > { %v355_v48 = vstv %s1090_s4  ;;  %s1638_s21 = sld [smem:[#allocation10 + $0x181]] }
  0x5e   : > { %v591_v58 = vstv %s1612_s28  ;;  %s1642_s16 = sld [smem:[#allocation10 + $0x1]] }
  0x5f   : > { %s1646_s6 = sld [smem:[#allocation10 + $0x204]] }
  0x60   : > { %s1657_s4 = sld [smem:[#allocation10 + $0x201]] }
  0x61   : > { %s1665_s28 = sld [smem:[#allocation10 + $0x202]] }
  0xbd   : > { %v330_v3 = vpop.permute.xlu0 %329 }
  0xbe   : > { %336 = vst.msk [vmem:[#allocation2 + $0x2] sm:$0xff] %vm335_vm2, %v330_v3 }
  0xc1   : > { %v332_v4 = vpop.permute.xlu0 %331 }
  0xc2   : > { %337 = vst.msk [vmem:[#allocation2 + $0xa] sm:$0xff] %vm335_vm2, %v332_v4 }
  0xc5   : > { %v1542_v7 = vld [vmem:[#allocation2 + $0x2] sm:$0xff] }
  0xc6   : > { %v1544_v8 = vld [vmem:[#allocation2 + $0x1] sm:$0xff]  ;;  %v456_v9 = vmul.f32 %v455_v5, %v1542_v7  ;;  %v443_v32 = vmul.f32 %v442_v30, %v1542_v7  ;;  %v482_v35 = vmul.f32 %v481_v33, %v1542_v7  ;;  %v495_v38 = vmul.f32 %v494_v36, %v1542_v7 }
  0xc7   : > { %v402_v10 = vmul.f32 %v401_v6, %v1544_v8  ;;  %v376_v23 = vmul.f32 %v375_v21, %v1544_v8  ;;  %v389_v26 = vmul.f32 %v388_v24, %v1544_v8  ;;  %v428_v29 = vmul.f32 %v427_v27, %v1544_v8  ;;  %v1610_v47 = vld [vmem:[#allocation2] sm:$0xff] }
  0xc8   : > { %460 = vrot.lane.b32.xlu0 %v456_v9, %s1351_s9  ;;  %v356_v49 = vmul.f32 %v355_v48, %v1610_v47 }
  0xc9   : > { %406 = vrot.lane.b32.xlu1 %v402_v10, %s1353_s17  ;;  %v1553_v12 = vld [vmem:[#allocation2 + $0x9] sm:$0xff] }
  0xca   : > { %v1555_v13 = vld [vmem:[#allocation2 + $0x3] sm:$0xff]  ;;  %v403_v14 = vmul.f32 %v401_v6, %v1553_v12  ;;  %v1568_v20 = vld [vmem:[#allocation2 + $0xb] sm:$0xff]  ;;  %v377_v28 = vmul.f32 %v375_v21, %v1553_v12  ;;  %v390_v31 = vmul.f32 %v388_v24, %v1553_v12  ;;  %v429_v34 = vmul.f32 %v427_v27, %v1553_v12 }
  0xcb   : > { %v510_v15 = vmul.f32 %v509_v11, %v1555_v13  ;;  %v1560_v17 = vld [vmem:[#allocation2 + $0xa] sm:$0xff]  ;;  %v562_v18 = vmul.f32 %v561_v16, %v1555_v13  ;;  %v511_v22 = vmul.f32 %v509_v11, %v1568_v20  ;;  %v563_v25 = vmul.f32 %v561_v16, %v1568_v20 }
  0xcc   : > { %v457_v19 = vmul.f32 %v455_v5, %v1560_v17  ;;  %v444_v37 = vmul.f32 %v442_v30, %v1560_v17  ;;  %v483_v40 = vmul.f32 %v481_v33, %v1560_v17  ;;  %v536_v41 = vmul.f32 %v535_v39, %v1555_v13  ;;  %v1619_v56 = vld [vmem:[#allocation2 + $0x8] sm:$0xff] }
  0xcd   : > { %514 = vrot.lane.b32.xlu0 %v510_v15, %s1354_s10  ;;  %408 = vrot.lane.b32.xlu1 %v403_v14, %s1353_s17  ;;  %v496_v43 = vmul.f32 %v494_v36, %v1560_v17  ;;  %v549_v44 = vmul.f32 %v548_v42, %v1555_v13  ;;  %v537_v45 = vmul.f32 %v535_v39, %v1568_v20  ;;  %v1621_v57 = vld [vmem:[#allocation2 + $0x4] sm:$0xff]  ;;  %v350_v5 = vstv %s1615_s30  ;;  %v1633_v10 = vld [vmem:[#allocation2 + $0xc] sm:$0xff]  ;;  %s268_s30 = sld [smem:[#allocation10]] }
  0xce   : > { %v550_v46 = vmul.f32 %v548_v42, %v1568_v20  ;;  %v357_v62 = vmul.f32 %v355_v48, %v1619_v56  ;;  %v592_v63 = vmul.f32 %v591_v58, %v1621_v57  ;;  %v360_v6 = vstv %s1617_s18  ;;  %s1107_s18 = sld [smem:[#allocation10 + $0x200]] }
  0xcf   : > { %v351_v14 = vmul.f32 %v350_v5, %v1610_v47  ;;  %v361_v15 = vmul.f32 %v360_v6, %v1610_v47  ;;  %v593_v21 = vmul.f32 %v591_v58, %v1633_v10  ;;  %v362_v30 = vmul.f32 %v360_v6, %v1619_v56 }
  0xd0   : > { %v345_v36 = vstv %s1642_s16  ;;  %v586_v58 = vstv %s1665_s28  ;;  %s1126_s16 = sld [smem:[#allocation11 + $0x180]] }
  0xd1   : > { %566 = vrot.lane.b32.xlu0 %v562_v18, %s1355_s19  ;;  %462 = vrot.lane.b32.xlu1 %v457_v19, %s1351_s9  ;;  %v414_v19 = vstv %s1624_s12  ;;  %s318_s12 = sld [smem:[#allocation4]] }
  0xd2   : > { %s1117_s28 = sld [smem:[#allocation11 + $0x81]] }
  0xd5   : > { %516 = vrot.lane.b32.xlu1 %v511_v22, %s1354_s10  ;;  %380 = vrot.lane.b32.xlu0 %v376_v23, %s1353_s17 }
  0xd9   : > { %568 = vrot.lane.b32.xlu1 %v563_v25, %s1355_s19  ;;  %393 = vrot.lane.b32.xlu0 %v389_v26, %s1353_s17  ;;  %v415_v25 = vmul.f32 %v414_v19, %v1544_v8  ;;  %v522_v8 = vstv %s1638_s21  ;;  %s1122_s21 = sld [smem:[#allocation11 + $0x101]] }
  0xdd   : > { %382 = vrot.lane.b32.xlu1 %v377_v28, %s1353_s17  ;;  %432 = vrot.lane.b32.xlu0 %v428_v29, %s1356_s15  ;;  %v468_v28 = vstv %s1630_s20  ;;  %v352_v29 = vmul.f32 %v350_v5, %v1619_v56  ;;  %s1118_s20 = sld [smem:[#allocation11 + $0x82]] }
  0xe1   : > { %395 = vrot.lane.b32.xlu1 %v390_v31, %s1353_s17  ;;  %447 = vrot.lane.b32.xlu0 %v443_v32, %s1351_s9  ;;  %v469_v31 = vmul.f32 %v468_v28, %v1542_v7  ;;  %v596_v7 = vstv %s1646_s6  ;;  %s1130_s6 = sld [smem:[#allocation11 + $0x184]] }
  0xe5   : > { %434 = vrot.lane.b32.xlu1 %v429_v34, %s1356_s15  ;;  %486 = vrot.lane.b32.xlu0 %v482_v35, %s1357_s11 }
  0xe9   : > { %449 = vrot.lane.b32.xlu1 %v444_v37, %s1351_s9  ;;  %499 = vrot.lane.b32.xlu0 %v495_v38, %s1357_s11  ;;  %v416_v37 = vmul.f32 %v414_v19, %v1553_v12  ;;  %v523_v38 = vmul.f32 %v522_v8, %v1555_v13 }
  0xed   : > { %488 = vrot.lane.b32.xlu1 %v483_v40, %s1357_s11  ;;  %540 = vrot.lane.b32.xlu0 %v536_v41, %s1355_s19  ;;  %v346_v41 = vmul.f32 %v345_v36, %v1610_v47 }
  0xf1   : > { %501 = vrot.lane.b32.xlu1 %v496_v43, %s1357_s11  ;;  %553 = vrot.lane.b32.xlu0 %v549_v44, %s1355_s19  ;;  %v470_v43 = vmul.f32 %v468_v28, %v1560_v17  ;;  %v597_v44 = vmul.f32 %v596_v7, %v1621_v57  ;;  %v347_v17 = vmul.f32 %v345_v36, %v1619_v56 }
  0xf5   : > { %542 = vrot.lane.b32.xlu1 %v537_v45, %s1355_s19 }
  0xf9   : > { %555 = vrot.lane.b32.xlu1 %v550_v46, %s1355_s19 }
 0x13a   : > { %v461_v50 = vpop.permute.xlu0 %460 }
 0x13b   : > { %v407_v51 = vpop.permute.xlu1 %406 }
 0x13c   : > { %v412_v52 = vadd.f32 %v407_v51, %v356_v49  ;;  %v581_v49 = vstv %s1657_s4  ;;  %v524_v51 = vmul.f32 %v522_v8, %v1568_v20  ;;  %s1701_s4 = sld [smem:[#allocation11 + $0x80]] }
 0x13d   : > { %v583_v6 = vmul.f32 %v581_v49, %v1633_v10 }
 0x13e   : > { %v466_v53 = vadd.f32 %v461_v50, %v412_v52 }
 0x13f   : > { %v515_v54 = vpop.permute.xlu0 %514  ;;  %v409_v55 = vpop.permute.xlu1 %408 }
 0x140   : > { %v520_v59 = vadd.f32 %v515_v54, %v466_v53  ;;  %v413_v1 = vadd.f32 %v409_v55, %v357_v62  ;;  %v582_v54 = vmul.f32 %v581_v49, %v1621_v57 }
 0x143   : > { %v567_v60 = vpop.permute.xlu0 %566  ;;  %v463_v61 = vpop.permute.xlu1 %462 }
 0x144   : > { %v572_v0 = vadd.f32 %v567_v60, %v520_v59  ;;  %v467_v9 = vadd.f32 %v463_v61, %v413_v1  ;;  %v598_v61 = vmul.f32 %v596_v7, %v1633_v10 }
 0x146   : > { %v594_v2 = vadd.f32 %v592_v63, %v572_v0  ;;  %v587_v0 = vmul.f32 %v586_v58, %v1621_v57 }
 0x147   : > { %v517_v3 = vpop.permute.xlu1 %516  ;;  %v381_v4 = vpop.permute.xlu0 %380 }
 0x148   : > { %621 = vrot.lane.b32.xlu0 %v594_v2, %s1355_s19  ;;  %v521_v11 = vadd.f32 %v517_v3, %v467_v9  ;;  %v386_v42 = vadd.f32 %v381_v4, %v346_v41 }
 0x14b   : > { %v569_v16 = vpop.permute.xlu1 %568  ;;  %v394_v18 = vpop.permute.xlu0 %393 }
 0x14c   : > { %v573_v22 = vadd.f32 %v569_v16, %v521_v11  ;;  %v399_v23 = vadd.f32 %v394_v18, %v351_v14  ;;  %365 = vrot.lane.b32.xlu0 %v361_v15, %s1358_s27  ;;  %v588_v16 = vmul.f32 %v586_v58, %v1633_v10 }
 0x14e   : > { %v595_v24 = vadd.f32 %v593_v21, %v573_v22 }
 0x14f   : > { %v383_v26 = vpop.permute.xlu1 %382  ;;  %v433_v27 = vpop.permute.xlu0 %432 }
 0x150   : > { %623 = vrot.lane.b32.xlu1 %v595_v24, %s1355_s19  ;;  %419 = vrot.lane.b32.xlu0 %v415_v25, %s1356_s15  ;;  %v438_v45 = vadd.f32 %v433_v27, %v386_v42  ;;  %v387_v59 = vadd.f32 %v383_v26, %v347_v17 }
 0x153   : > { %v396_v32 = vpop.permute.xlu1 %395  ;;  %v448_v33 = vpop.permute.xlu0 %447 }
 0x154   : > { %v400_v34 = vadd.f32 %v396_v32, %v352_v29  ;;  %v453_v35 = vadd.f32 %v448_v33, %v399_v23  ;;  %367 = vrot.lane.b32.xlu1 %v362_v30, %s1358_s27  ;;  %473 = vrot.lane.b32.xlu0 %v469_v31, %s1357_s11  ;;  %v340_v23 = vstv %s268_s30  ;;  %v576_v32 = vstv %s1107_s18  ;;  %s1120_s30 = sld [smem:[#allocation11 + $0x84]] }
 0x155   : > { %v341_v26 = vmul.f32 %v340_v23, %v1610_v47  ;;  %s1121_s18 = sld [smem:[#allocation11 + $0x100]] }
 0x157   : > { %v435_v39 = vpop.permute.xlu1 %434  ;;  %v487_v40 = vpop.permute.xlu0 %486 }
 0x158   : > { %421 = vrot.lane.b32.xlu1 %v416_v37, %s1356_s15  ;;  %527 = vrot.lane.b32.xlu0 %v523_v38, %s1355_s19  ;;  %v492_v50 = vadd.f32 %v487_v40, %v438_v45  ;;  %v439_v1 = vadd.f32 %v435_v39, %v387_v59  ;;  %v577_v37 = vmul.f32 %v576_v32, %v1621_v57 }
 0x15b   : > { %v450_v12 = vpop.permute.xlu1 %449  ;;  %v500_v13 = vpop.permute.xlu0 %499 }
 0x15c   : > { %v454_v46 = vadd.f32 %v450_v12, %v400_v34  ;;  %v505_v48 = vadd.f32 %v500_v13, %v453_v35  ;;  %475 = vrot.lane.b32.xlu1 %v470_v43, %s1357_s11  ;;  %601 = vrot.lane.b32.xlu0 %v597_v44, %s1358_s27  ;;  %v342_v35 = vmul.f32 %v340_v23, %v1619_v56  ;;  %v639_v56 = vstv %s318_s12  ;;  %s1124_s12 = sld [smem:[#allocation11 + $0x103]] }
 0x15d   : > { %v578_v43 = vmul.f32 %v576_v32, %v1633_v10 }
 0x15f   : > { %v489_v52 = vpop.permute.xlu1 %488  ;;  %v541_v53 = vpop.permute.xlu0 %540 }
 0x160   : > { %v546_v55 = vadd.f32 %v541_v53, %v492_v50  ;;  %529 = vrot.lane.b32.xlu1 %v524_v51, %s1355_s19  ;;  %v493_v3 = vadd.f32 %v489_v52, %v439_v1  ;;  %v774_v1 = vstv %s1122_s21  ;;  %s1129_s21 = sld [smem:[#allocation11 + $0x183]] }
 0x162   : > { %v584_v60 = vadd.f32 %v582_v54, %v546_v55 }
 0x163   : > { %v502_v62 = vpop.permute.xlu1 %501  ;;  %v554_v63 = vpop.permute.xlu0 %553 }
 0x164   : > { %v506_v20 = vadd.f32 %v502_v62, %v454_v46  ;;  %v559_v2 = vadd.f32 %v554_v63, %v505_v48  ;;  %603 = vrot.lane.b32.xlu1 %v598_v61, %s1358_s27  ;;  %611 = vrot.lane.b32.xlu0 %v584_v60, %s1355_s19  ;;  %v720_v60 = vstv %s1118_s20  ;;  %s1125_s20 = sld [smem:[#allocation11 + $0x104]] }
 0x166   : > { %v589_v4 = vadd.f32 %v587_v0, %v559_v2  ;;  %v828_v2 = vstv %s1126_s16  ;;  %s1762_s16 = sld [smem:[#allocation11 + $0x2]] }
 0x167   : > { %v543_v5 = vpop.permute.xlu1 %542 }
 0x168   : > { %v547_v9 = vadd.f32 %v543_v5, %v493_v3 }
 0x16a   : > { %v585_v11 = vadd.f32 %v583_v6, %v547_v9 }
 0x16b   : > { %v556_v14 = vpop.permute.xlu1 %555 }
 0x16c   : > { %v560_v15 = vadd.f32 %v556_v14, %v506_v20  ;;  %613 = vrot.lane.b32.xlu1 %v585_v11, %s1355_s19  ;;  %v880_v11 = vstv %s1130_s6  ;;  %s1764_s6 = sld [smem:[#allocation11 + $0x4]] }
 0x16e   : > { %v590_v18 = vadd.f32 %v588_v16, %v560_v15 }
 0x1ba   : > { %v622_v19 = vpop.permute.xlu0 %621 }
 0x1bb   : > { %v627_v21 = vadd.f32 %v622_v19, %v589_v4 }
 0x1bd   : > { %631 = vrot.lane.b32.xlu0 %v627_v21, %s1357_s11 }
 0x1be   : > { %v366_v22 = vpop.permute.xlu0 %365 }
 0x1bf   : > { %v371_v28 = vadd.f32 %v366_v22, %v341_v26  ;;  %v707_v22 = vstv %s1117_s28  ;;  %s1777_s28 = sld [smem:[#allocation11 + $0x102]] }
 0x1c2   : > { %v624_v24 = vpop.permute.xlu1 %623  ;;  %v420_v25 = vpop.permute.xlu0 %419 }
 0x1c3   : > { %v628_v27 = vadd.f32 %v624_v24, %v590_v18  ;;  %v425_v31 = vadd.f32 %v420_v25, %v371_v28  ;;  %v694_v18 = vstv %s1701_s4  ;;  %v746_v25 = vstv %s1120_s30  ;;  %s1771_s4 = sld [smem:[#allocation11 + $0x83]] }
 0x1c4   : > { %v761_v28 = vstv %s1121_s18  ;;  %s1785_s30 = sld [smem:[#allocation11 + $0x181]] }
 0x1c5   : > { %633 = vrot.lane.b32.xlu1 %v628_v27, %s1357_s11  ;;  %s1789_s18 = sld [smem:[#allocation11 + $0x1]] }
 0x1c6   : > { %v368_v29 = vpop.permute.xlu1 %367  ;;  %v474_v30 = vpop.permute.xlu0 %473 }
 0x1c7   : > { %v479_v33 = vadd.f32 %v474_v30, %v425_v31  ;;  %v372_v38 = vadd.f32 %v368_v29, %v342_v35  ;;  %v800_v31 = vstv %s1124_s12  ;;  %s1793_s12 = sld [smem:[#allocation11 + $0x204]] }
 0x1ca   : > { %v422_v8 = vpop.permute.xlu1 %421  ;;  %v528_v34 = vpop.permute.xlu0 %527 }
 0x1cb   : > { %v533_v36 = vadd.f32 %v528_v34, %v479_v33  ;;  %v426_v47 = vadd.f32 %v422_v8, %v372_v38  ;;  %v813_v8 = vstv %s1125_s20  ;;  %s1804_s20 = sld [smem:[#allocation11 + $0x201]] }
 0x1cd   : > { %v579_v39 = vadd.f32 %v577_v37, %v533_v36 }
 0x1ce   : > { %v476_v40 = vpop.permute.xlu1 %475  ;;  %v602_v12 = vpop.permute.xlu0 %601 }
 0x1cf   : > { %v480_v7 = vadd.f32 %v476_v40, %v426_v47  ;;  %v607_v45 = vadd.f32 %v602_v12, %v579_v39  ;;  %v867_v39 = vstv %s1129_s21  ;;  %s1142_s21 = sshll.u32 %s1419_s2, 8  ;;  %s1359_s2 = smov [#allocation13]  }
 0x1d2   : > { %v530_v41 = vpop.permute.xlu1 %529 }
 0x1d3   : > { %v534_v42 = vadd.f32 %v530_v41, %v480_v7 }
 0x1d5   : > { %v580_v44 = vadd.f32 %v578_v43, %v534_v42 }
 0x1d6   : > { %v612_v13 = vpop.permute.xlu0 %611  ;;  %v604_v48 = vpop.permute.xlu1 %603 }
 0x1d7   : > { %v617_v46 = vadd.f32 %v612_v13, %v607_v45  ;;  %v608_v52 = vadd.f32 %v604_v48, %v580_v44 }
 0x1de   : > { %v614_v51 = vpop.permute.xlu1 %613 }
 0x1df   : > { %v618_v17 = vadd.f32 %v614_v51, %v608_v52 }
 0x22f   : > { %v632_v49 = vpop.permute.xlu0 %631 }
 0x230   : > { %v637_v50 = vadd.f32 %v632_v49, %v617_v46 }
 0x232   : > { %v640_v57 = vadd.f32 %v639_v56, %v637_v50 }
 0x234   : > { %v642_v53 = vmax.f32 %v640_v57, 0.0 }
 0x236   : > { %649 = vrot.lane.b32.xlu0 %v642_v53, %s1351_s9 }
 0x237   : > { %v634_v54 = vpop.permute.xlu1 %633 }
 0x238   : > { %v638_v55 = vadd.f32 %v634_v54, %v618_v17 }
 0x23a   : > { %v641_v10 = vadd.f32 %v639_v56, %v638_v55 }
 0x23c   : > { %v643_v58 = vmax.f32 %v641_v10, 0.0 }
 0x23e   : > { %651 = vrot.lane.b32.xlu1 %v643_v58, %s1351_s9 }
 0x2a8   : > { %v650_v59 = vpop.permute.xlu0 %649 }
 0x2a9   : > { %655 = vst.msk [vmem:[#allocation3 + $0x2] sm:$0xff] %vm335_vm2, %v650_v59 }
 0x2b0   : > { %v652_v61 = vpop.permute.xlu1 %651  ;;  %v1693_v62 = vld [vmem:[#allocation3 + $0x1] sm:$0xff] }
 0x2b1   : > { %656 = vst.msk [vmem:[#allocation3 + $0xa] sm:$0xff] %vm335_vm2, %v652_v61  ;;  %v721_v63 = vmul.f32 %v720_v60, %v1693_v62  ;;  %v1697_v0 = vld [vmem:[#allocation3 + $0x2] sm:$0xff]  ;;  %v695_v21 = vmul.f32 %v694_v18, %v1693_v62  ;;  %v708_v24 = vmul.f32 %v707_v22, %v1693_v62  ;;  %v747_v27 = vmul.f32 %v746_v25, %v1693_v62 }
 0x2b2   : > { %v775_v20 = vmul.f32 %v774_v1, %v1697_v0  ;;  %v762_v30 = vmul.f32 %v761_v28, %v1697_v0  ;;  %v801_v33 = vmul.f32 %v800_v31, %v1697_v0  ;;  %v814_v35 = vmul.f32 %v813_v8, %v1697_v0  ;;  %v1757_v44 = vld [vmem:[#allocation3] sm:$0xff] }
 0x2b3   : > { %725 = vrot.lane.b32.xlu0 %v721_v63, %s1353_s17  ;;  %v669_v61 = vstv %s1762_s16  ;;  %v679_v63 = vstv %s1764_s6  ;;  %s1843_s6 = scalar_lea.hbm %s1893_s5, %s1142_s21 }
 0x2b7   : > { %779 = vrot.lane.b32.xlu0 %v775_v20, %s1351_s9 }
 0x2b8   : > { %v1704_v3 = vld [vmem:[#allocation3 + $0x9] sm:$0xff] }
 0x2b9   : > { %v1706_v4 = vld [vmem:[#allocation3 + $0x3] sm:$0xff]  ;;  %v722_v5 = vmul.f32 %v720_v60, %v1704_v3  ;;  %v1716_v16 = vld [vmem:[#allocation3 + $0xb] sm:$0xff]  ;;  %v696_v26 = vmul.f32 %v694_v18, %v1704_v3  ;;  %v709_v29 = vmul.f32 %v707_v22, %v1704_v3  ;;  %v748_v32 = vmul.f32 %v746_v25, %v1704_v3 }
 0x2ba   : > { %v829_v6 = vmul.f32 %v828_v2, %v1706_v4  ;;  %v1710_v9 = vld [vmem:[#allocation3 + $0xa] sm:$0xff]  ;;  %v881_v15 = vmul.f32 %v880_v11, %v1706_v4  ;;  %v830_v19 = vmul.f32 %v828_v2, %v1716_v16  ;;  %v882_v23 = vmul.f32 %v880_v11, %v1716_v16 }
 0x2bb   : > { %727 = vrot.lane.b32.xlu1 %v722_v5, %s1353_s17  ;;  %v776_v14 = vmul.f32 %v774_v1, %v1710_v9  ;;  %v763_v34 = vmul.f32 %v761_v28, %v1710_v9  ;;  %v802_v37 = vmul.f32 %v800_v31, %v1710_v9  ;;  %v815_v40 = vmul.f32 %v813_v8, %v1710_v9  ;;  %v1766_v49 = vld [vmem:[#allocation3 + $0x8] sm:$0xff] }
 0x2bc   : > { %833 = vrot.lane.b32.xlu0 %v829_v6, %s1354_s10  ;;  %v868_v47 = vmul.f32 %v867_v39, %v1706_v4  ;;  %v869_v41 = vmul.f32 %v867_v39, %v1716_v16  ;;  %v1768_v50 = vld [vmem:[#allocation3 + $0x4] sm:$0xff]  ;;  %v1780_v20 = vld [vmem:[#allocation3 + $0xc] sm:$0xff]  ;;  %v670_v5 = vmul.f32 %v669_v61, %v1757_v44  ;;  %v680_v6 = vmul.f32 %v679_v63, %v1757_v44 }
 0x2bd   : > { %v681_v28 = vmul.f32 %v679_v63, %v1766_v49  ;;  %v664_v8 = vstv %s1789_s18 }
 0x2bf   : > { %781 = vrot.lane.b32.xlu1 %v776_v14, %s1351_s9 }
 0x2c0   : > { %885 = vrot.lane.b32.xlu0 %v881_v15, %s1355_s19  ;;  %v733_v15 = vstv %s1771_s4  ;;  %s967_s4 = scalar_lea.sflag [#allocation8], %s1513_s13 }
 0x2c3   : > { %835 = vrot.lane.b32.xlu1 %v830_v19, %s1354_s10  ;;  %s1128_s10 = sld [smem:[#allocation11 + $0x182]] }
 0x2c4   : > { %699 = vrot.lane.b32.xlu0 %v695_v21, %s1353_s17 }
 0x2c7   : > { %887 = vrot.lane.b32.xlu1 %v882_v23, %s1355_s19  ;;  %v734_v23 = vmul.f32 %v733_v15, %v1693_v62  ;;  %v841_v62 = vstv %s1785_s30 }
 0x2c8   : > { %712 = vrot.lane.b32.xlu0 %v708_v24, %s1353_s17 }
 0x2c9   : > { %v854_v36 = vstv %s1128_s10  ;;  %s1812_s10 = sld [smem:[#allocation11 + $0x202]] }
 0x2ca   : > { %v855_v38 = vmul.f32 %v854_v36, %v1706_v4  ;;  %v856_v7 = vmul.f32 %v854_v36, %v1716_v16 }
 0x2cb   : > { %701 = vrot.lane.b32.xlu1 %v696_v26, %s1353_s17  ;;  %v787_v26 = vstv %s1777_s28  ;;  %s1276_s28 = sshll.u32 %s1359_s2, 4  ;;  %s1277_s28 = int_to_ptr.vmem [resolvable:$false] %s1276_s28 }
 0x2cc   : > { %751 = vrot.lane.b32.xlu0 %v747_v27, %s1356_s15  ;;  %v671_v27 = vmul.f32 %v669_v61, %v1766_v49  ;;  %s1278_s30 = scalar_lea.vmem %s1277_s28, 512 }
 0x2cf   : > { %714 = vrot.lane.b32.xlu1 %v709_v29, %s1353_s17  ;;  %s1759_s17 = sld [smem:[#allocation11 + $0x203]]  ;;  %v788_v29 = vmul.f32 %v787_v26, %v1697_v0  ;;  %v915_v0 = vstv %s1793_s12 }
 0x2d0   : > { %766 = vrot.lane.b32.xlu0 %v762_v30, %s1351_s9 }
 0x2d3   : > { %753 = vrot.lane.b32.xlu1 %v748_v32, %s1356_s15 }
 0x2d4   : > { %805 = vrot.lane.b32.xlu0 %v801_v33, %s1357_s11 }
 0x2d5   : > { %v910_v57 = vstv %s1759_s17 }
 0x2d6   : > { %v911_v54 = vmul.f32 %v910_v57, %v1768_v50  ;;  %v912_v18 = vmul.f32 %v910_v57, %v1780_v20  ;;  %v905_v57 = vstv %s1812_s10 }
 0x2d7   : > { %768 = vrot.lane.b32.xlu1 %v763_v34, %s1351_s9  ;;  %s1114_s9 = sld [smem:[#allocation11 + $0x3]]  ;;  %v735_v34 = vmul.f32 %v733_v15, %v1704_v3 }
 0x2d8   : > { %818 = vrot.lane.b32.xlu0 %v814_v35, %s1357_s11  ;;  %v842_v35 = vmul.f32 %v841_v62, %v1706_v4 }
 0x2db   : > { %807 = vrot.lane.b32.xlu1 %v802_v37, %s1357_s11 }
 0x2dc   : > { %859 = vrot.lane.b32.xlu0 %v855_v38, %s1355_s19  ;;  %v665_v38 = vmul.f32 %v664_v8, %v1757_v44 }
 0x2dd   : > { %v674_v43 = vstv %s1114_s9 }
 0x2de   : > { %v675_v13 = vmul.f32 %v674_v43, %v1757_v44  ;;  %v676_v17 = vmul.f32 %v674_v43, %v1766_v49  ;;  %v900_v43 = vstv %s1804_s20 }
 0x2df   : > { %820 = vrot.lane.b32.xlu1 %v815_v40, %s1357_s11  ;;  %v789_v40 = vmul.f32 %v787_v26, %v1710_v9  ;;  %v666_v9 = vmul.f32 %v664_v8, %v1766_v49  ;;  %v902_v63 = vmul.f32 %v900_v43, %v1780_v20 }
 0x2e0   : > { %872 = vrot.lane.b32.xlu0 %v868_v47, %s1355_s19  ;;  %v916_v47 = vmul.f32 %v915_v0, %v1768_v50 }
 0x2e3   : > { %861 = vrot.lane.b32.xlu1 %v856_v7, %s1355_s19 }
 0x2e7   : > { %874 = vrot.lane.b32.xlu1 %v869_v41, %s1355_s19 }
 0x325   : > { %v726_v42 = vpop.permute.xlu0 %725 }
 0x326   : > { %v731_v45 = vadd.f32 %v726_v42, %v675_v13  ;;  %v843_v13 = vmul.f32 %v841_v62, %v1716_v16 }
 0x329   : > { %v780_v12 = vpop.permute.xlu0 %779 }
 0x32a   : > { %v785_v56 = vadd.f32 %v780_v12, %v731_v45 }
 0x32d   : > { %v728_v46 = vpop.permute.xlu1 %727 }
 0x32e   : > { %v834_v48 = vpop.permute.xlu0 %833  ;;  %v732_v10 = vadd.f32 %v728_v46, %v676_v17 }
 0x32f   : > { %v839_v51 = vadd.f32 %v834_v48, %v785_v56  ;;  %v901_v48 = vmul.f32 %v900_v43, %v1768_v50 }
 0x331   : > { %v782_v52 = vpop.permute.xlu1 %781 }
 0x332   : > { %v886_v53 = vpop.permute.xlu0 %885  ;;  %v786_v1 = vadd.f32 %v782_v52, %v732_v10 }
 0x333   : > { %v891_v55 = vadd.f32 %v886_v53, %v839_v51  ;;  %v917_v53 = vmul.f32 %v915_v0, %v1780_v20 }
 0x335   : > { %v913_v58 = vadd.f32 %v911_v54, %v891_v55  ;;  %v836_v59 = vpop.permute.xlu1 %835  ;;  %v906_v55 = vmul.f32 %v905_v57, %v1768_v50 }
 0x336   : > { %v700_v60 = vpop.permute.xlu0 %699  ;;  %v840_v2 = vadd.f32 %v836_v59, %v786_v1 }
 0x337   : > { %940 = vrot.lane.b32.xlu0 %v913_v58, %s1355_s19  ;;  %v705_v39 = vadd.f32 %v700_v60, %v665_v38 }
 0x339   : > { %v888_v11 = vpop.permute.xlu1 %887 }
 0x33a   : > { %v713_v14 = vpop.permute.xlu0 %712  ;;  %v892_v19 = vadd.f32 %v888_v11, %v840_v2  ;;  %v907_v11 = vmul.f32 %v905_v57, %v1780_v20 }
 0x33b   : > { %v718_v21 = vadd.f32 %v713_v14, %v670_v5  ;;  %684 = vrot.lane.b32.xlu0 %v680_v6, %s1358_s27 }
 0x33c   : > { %v914_v22 = vadd.f32 %v912_v18, %v892_v19 }
 0x33d   : > { %v702_v24 = vpop.permute.xlu1 %701 }
 0x33e   : > { %v752_v25 = vpop.permute.xlu0 %751  ;;  %942 = vrot.lane.b32.xlu1 %v914_v22, %s1355_s19  ;;  %v706_v51 = vadd.f32 %v702_v24, %v666_v9 }
 0x33f   : > { %738 = vrot.lane.b32.xlu0 %v734_v23, %s1356_s15  ;;  %v757_v7 = vadd.f32 %v752_v25, %v705_v39 }
 0x341   : > { %v715_v30 = vpop.permute.xlu1 %714 }
 0x342   : > { %v767_v31 = vpop.permute.xlu0 %766  ;;  %v719_v32 = vadd.f32 %v715_v30, %v671_v27  ;;  %686 = vrot.lane.b32.xlu1 %v681_v28, %s1358_s27 }
 0x343   : > { %v772_v33 = vadd.f32 %v767_v31, %v718_v21  ;;  %792 = vrot.lane.b32.xlu0 %v788_v29, %s1357_s11 }
 0x345   : > { %v754_v36 = vpop.permute.xlu1 %753 }
 0x346   : > { %v806_v37 = vpop.permute.xlu0 %805  ;;  %740 = vrot.lane.b32.xlu1 %v735_v34, %s1356_s15  ;;  %v758_v10 = vadd.f32 %v754_v36, %v706_v51  ;;  %s293_s15 = sld [smem:[#allocation11]] }
 0x347   : > { %846 = vrot.lane.b32.xlu0 %v842_v35, %s1355_s19  ;;  %v811_v12 = vadd.f32 %v806_v37, %v757_v7 }
 0x349   : > { %v769_v3 = vpop.permute.xlu1 %768 }
 0x34a   : > { %v819_v4 = vpop.permute.xlu0 %818  ;;  %v773_v41 = vadd.f32 %v769_v3, %v719_v32  ;;  %794 = vrot.lane.b32.xlu1 %v789_v40, %s1357_s11 }
 0x34b   : > { %v824_v42 = vadd.f32 %v819_v4, %v772_v33  ;;  %920 = vrot.lane.b32.xlu0 %v916_v47, %s1358_s27 }
 0x34c   : > { %v659_v21 = vstv %s293_s15 }
 0x34d   : > { %v808_v45 = vpop.permute.xlu1 %807  ;;  %v660_v24 = vmul.f32 %v659_v21, %v1757_v44  ;;  %v661_v33 = vmul.f32 %v659_v21, %v1766_v49 }
 0x34e   : > { %v860_v46 = vpop.permute.xlu0 %859  ;;  %848 = vrot.lane.b32.xlu1 %v843_v13, %s1355_s19  ;;  %v812_v59 = vadd.f32 %v808_v45, %v758_v10 }
 0x34f   : > { %v865_v56 = vadd.f32 %v860_v46, %v811_v12 }
 0x351   : > { %v903_v52 = vadd.f32 %v901_v48, %v865_v56  ;;  %v821_v17 = vpop.permute.xlu1 %820 }
 0x352   : > { %v873_v54 = vpop.permute.xlu0 %872  ;;  %v825_v16 = vadd.f32 %v821_v17, %v773_v41  ;;  %922 = vrot.lane.b32.xlu1 %v917_v53, %s1358_s27  ;;  %s1131_s27 = sld [smem:[#allocation11 + $0x200]] }
 0x353   : > { %v878_v58 = vadd.f32 %v873_v54, %v824_v42  ;;  %930 = vrot.lane.b32.xlu0 %v903_v52, %s1355_s19 }
 0x355   : > { %v908_v60 = vadd.f32 %v906_v55, %v878_v58  ;;  %v862_v61 = vpop.permute.xlu1 %861 }
 0x356   : > { %v866_v1 = vadd.f32 %v862_v61, %v812_v59 }
 0x358   : > { %v904_v2 = vadd.f32 %v902_v63, %v866_v1  ;;  %v895_v30 = vstv %s1131_s27 }
 0x359   : > { %v875_v5 = vpop.permute.xlu1 %874  ;;  %v896_v34 = vmul.f32 %v895_v30, %v1768_v50  ;;  %v897_v40 = vmul.f32 %v895_v30, %v1780_v20 }
 0x35a   : > { %v879_v6 = vadd.f32 %v875_v5, %v825_v16  ;;  %932 = vrot.lane.b32.xlu1 %v904_v2, %s1355_s19  ;;  %s319_s19 = sld [smem:[#allocation5]] }
 0x35c   : > { %v909_v14 = vadd.f32 %v907_v11, %v879_v6 }
 0x360   : > { %v958_v42 = vstv %s319_s19 }
 0x3a9   : > { %v941_v15 = vpop.permute.xlu0 %940 }
 0x3aa   : > { %v946_v18 = vadd.f32 %v941_v15, %v908_v60 }
 0x3ac   : > { %950 = vrot.lane.b32.xlu0 %v946_v18, %s1357_s11 }
 0x3ad   : > { %v685_v19 = vpop.permute.xlu0 %684 }
 0x3ae   : > { %v690_v26 = vadd.f32 %v685_v19, %v660_v24 }
 0x3b0   : > { %v943_v22 = vpop.permute.xlu1 %942 }
 0x3b1   : > { %v739_v23 = vpop.permute.xlu0 %738  ;;  %v947_v25 = vadd.f32 %v943_v22, %v909_v14 }
 0x3b2   : > { %v744_v29 = vadd.f32 %v739_v23, %v690_v26 }
 0x3b3   : > { %952 = vrot.lane.b32.xlu1 %v947_v25, %s1357_s11  ;;  %s267_s11 = scalar_lea.vmem [#allocation13], %s1084_s14 }
 0x3b4   : > { %v687_v27 = vpop.permute.xlu1 %686  ;;  %s980_s9 = sshll.u32 %s267_s11, 4  ;;  %s1845_s9 = int_to_ptr.vmem [resolvable:$true] %s980_s9 }
 0x3b5   : > { %v793_v28 = vpop.permute.xlu0 %792  ;;  %v691_v35 = vadd.f32 %v687_v27, %v661_v33  ;;  %s1272_s14 = scalar_lea.vmem %s1845_s9, 256  ;;  %p1279_p2 = scmp.lt.s32.totalorder %s1845_s9, %s1277_s28 }
 0x3b6   : > { %v798_v31 = vadd.f32 %v793_v28, %v744_v29  ;;  %p1273_p6 = scmp.ne.s32.totalorder %s1845_s9, %s1272_s14  ;;  %p1280_p0 = scmp.lt.s32.totalorder %s1278_s30, %s1272_s14 }
 0x3b8   : > { %v741_v62 = vpop.permute.xlu1 %740  ;;  %p1274_p9 = pnand %p1273_p6, %p1912_p8  ;;  %p1281_p3 = por %p1280_p0, %p1279_p2 }
 0x3b9   : > { %v847_v32 = vpop.permute.xlu0 %846  ;;  %v745_v44 = vadd.f32 %v741_v62, %v691_v35 }
 0x3ba   : > { %v852_v8 = vadd.f32 %v847_v32, %v798_v31  ;;  %p1275_p10 = pneg %p1274_p9 }
 0x3bc   : > { %v898_v36 = vadd.f32 %v896_v34, %v852_v8  ;;  %v795_v37 = vpop.permute.xlu1 %794  ;;  %p1282_p5 = pnand %p1281_p3, %p1275_p10 }
 0x3bd   : > { %v799_v0 = vadd.f32 %v795_v37, %v745_v44  ;;  %v921_v3 = vpop.permute.xlu0 %920 }
 0x3be   : > { %v926_v7 = vadd.f32 %v921_v3, %v898_v36 }
 0x3c0   : > { %v849_v38 = vpop.permute.xlu1 %848 }
 0x3c1   : > { %v853_v39 = vadd.f32 %v849_v38, %v799_v0 }
 0x3c3   : > { %v899_v47 = vadd.f32 %v897_v40, %v853_v39 }
 0x3c4   : > { %v923_v41 = vpop.permute.xlu1 %922 }
 0x3c5   : > { %v931_v4 = vpop.permute.xlu0 %930  ;;  %v927_v45 = vadd.f32 %v923_v41, %v899_v47 }
 0x3c6   : > { %v936_v49 = vadd.f32 %v931_v4, %v926_v7 }
 0x3cc   : > { %v933_v13 = vpop.permute.xlu1 %932 }
 0x3cd   : > { %v937_v20 = vadd.f32 %v933_v13, %v927_v45 }
 0x41e   : > { %v951_v50 = vpop.permute.xlu0 %950 }
 0x41f   : > { %v956_v43 = vadd.f32 %v951_v50, %v936_v49 }
 0x421   : > { %v959_v12 = vadd.f32 %v958_v42, %v956_v43 }
 0x423   : > { %v961_v46 = vmax.f32 %v959_v12, 0.0 }
 0x425   : > { %964 = vst.msk [vmem:[%s267_s11] sm:$0xff] %vm963_vm3, %v961_v46  ;;  %v953_v9 = vpop.permute.xlu1 %952 }
 0x426   : > { %v957_v48 = vadd.f32 %v953_v9, %v937_v20 }
 0x428   : > { %v960_v56 = vadd.f32 %v958_v42, %v957_v48 }
 0x42a   : > { %v962_v57 = vmax.f32 %v960_v56, 0.0 }
 0x42c   : > { %965 = vst.msk [vmem:[%s267_s11 + $0x8] sm:$0xff] %vm963_vm3, %v962_v57 }
 0x42d   : > { %1285 = shalt.err (!%p1282_p5)
}
 0x42e   : > { %s1286_s18 = scalar_lea.hbm %s1843_s6, 256  ;;  %s1290_s10 = scalar_lea.hbm %s1893_s5, 512 }
 0x42f   : > { %p1287_p4 = scmp.ne.s32.totalorder %s1843_s6, %s1286_s18  ;;  %p1291_p13 = scmp.lt.s32.totalorder %s1843_s6, %s1893_s5 }
 0x430   : > { %p1292_p1 = scmp.lt.s32.totalorder %s1290_s10, %s1286_s18 }
 0x431   : > { %p1288_p11 = pnand %p1287_p4, %p1912_p8 }
 0x432   : > { %p1293_p7 = por %p1292_p1, %p1291_p13 }
 0x433   : > { %p1289_p12 = pneg %p1288_p11 }
 0x435   : > { %p1294_p6 = pnand %p1293_p7, %p1289_p12 }
 0x437   : > { %1297 = shalt.err (!%p1294_p6)
}
 0x438   : > { %s1360_s19 = smov 128   ;;  %s1361_s11 = smov 8  }
 0x439   : > { %1153 = dma.vmem_to_hbm [thread:$0]  (%p1912_p8), %s1845_s9, 256, %s1843_s6, %s967_s4, %s1360_s19, %s1360_s19, %s1361_s11  }
 0x43a PF: > { %s995_s21 = sand.u32 1, %s1332_s22   ;;  %p1913_p9 = scmp.ne.s32.totalorder %s1901_s8, 0 }
 0x43b   : > { %p1914_p10 = scmp.ge.s32.totalorder %s1344_s25, 2  ;;  %s996_s17 = scalar_lea.sflag [#allocation8], %s995_s21 }
 0x43d   : > { %p1167_p2 = pnand %p1914_p10, %p1913_p9 }
 0x43f   : > { %p1168_p0 = pneg %p1167_p2 }
 0x441   : > { %1327 = dma.done.wait (%p1168_p0), %s996_s17, 256  }
 0x442   : > { %1329 = vsyncadd (%p1168_p0), %s996_s17, 4294967040  ;;  %p22_p3 = scmp.ge.s32.totalorder %s1423_s26, 4   ;;  %s1915_s22 = smov %s1336_s23 }
 0x443   : > { %s1916_s23 = smov %s1340_s24  ;;  %s1917_s24 = smov %s1435_s29 }
 0x444   : > { %s1918_s25 = smov %s1423_s26  ;;  %24 = sbr.rel (!%p22_p3) target bundleno = 10 (0xa), region = 94 }
 0x449   :  { %1001 = vsyncpa [#allocation7], 1 }
 0x44a   :  { %1003 = vsyncpa [#allocation7 + $0x1], 1 }
 0x44b   :  { %1004 = vsyncpa [#allocation8], 1 }
 0x44c   :  { %1006 = vsyncpa [#allocation8 + $0x1], 1 }
 0x44d   :  { %1007 = vsyncpa [#allocation9], 1 }
 0x44e   :  { %1009 = vsyncpa [#allocation9 + $0x1], 1 }
 0x44f   :  { %1010 = vsyncpa [#allocation12], 1 }

</bundles_post_ra>
